<compile_context>
chip_gen: v7x
topology: tpu7x:2x2x1
jax: 0.10.0
libtpu: 0.0.40
codegen_flags: <defaults>
</compile_context>

<pallas_src>
import functools

import jax
import jax.numpy as jnp
from jax.experimental import pallas as pl
from jax.experimental.pallas import tpu as pltpu


def _round_up(x, m):
    return (x + m - 1) // m * m


def _conv3d_dropout_kernel(x_ref, w_ref, b_ref, m_ref, o_ref, *, taps, HW, W, Lp):
    # x_ref: (ICp, FLp)    bf16  flat (d*H*W + h*W + w) input, this batch
    # w_ref: (T, OCp, ICp) bf16  per-tap conv weight (resident across steps)
    # b_ref: (OCp, 1)      f32   conv bias
    # m_ref: (OCp, 1)      f32   Dropout3d channel mask {0, 1/(1-p)}, this batch
    # o_ref: (OCp, Lp)     f32   flat output (od*H*W + oh*W + ow), lane-dense
    acc = jnp.zeros(o_ref.shape, jnp.float32)
    for t, (kd, kh, kw) in enumerate(taps):
        ofs = kd * HW + kh * W + kw                      # static python int
        x_t = x_ref[:, ofs:ofs + Lp]                     # (ICp, Lp) shifted slice
        # f32 accumulation of the tap contribution on the MXU.
        # NOTE: per-tap contraction is only ICp; for large IC this is fine, for
        # tiny IC the kernel is memory/VPU-bound anyway at these sizes.
        acc = acc + jnp.dot(w_ref[t], x_t, preferred_element_type=jnp.float32)
    o_ref[...] = ((acc + b_ref[...]) * m_ref[...]).astype(o_ref.dtype)   # f32 epilogue


def conv3d_dropout(x, weight, bias, drop_mask, *, kD, kH, kW):
    """x: (N, IC, D, H, W) f32.  weight: (OC, IC, kD, kH, kW) f32.  bias: (OC,) f32.
    drop_mask: (N, OC) f32 with values {0, 1/(1-p)} (all-ones for eval mode).
    Returns (N, OC, OD, OH, OW) f32 for stride=1, padding=0 (nn.Conv3d defaults)."""
    N, IC, D, H, W = x.shape
    OC = weight.shape[0]
    OD, OH, OW = D - kD + 1, H - kH + 1, W - kW + 1
    HW = H * W
    T = kD * kH * kW

    L = OD * HW                                # flat output rows incl. wrap waste
    Lp = _round_up(L, 128)
    ICp = _round_up(IC, 8)
    OCp = _round_up(OC, 8)
    ofs_max = (kD - 1) * HW + (kH - 1) * W + (kW - 1)
    FLp = _round_up(ofs_max + Lp, 128)

    # ---- glue: cast to bf16 BEFORE any pad/reshape (only input-sized work) ----
    xf = x.astype(jnp.bfloat16).reshape(N, IC, D * HW)
    xf = jnp.pad(xf, ((0, 0), (0, ICp - IC), (0, FLp - D * HW)))

    taps = tuple((kd, kh, kw)
                 for kd in range(kD) for kh in range(kH) for kw in range(kW))
    w_taps = jnp.transpose(weight, (2, 3, 4, 0, 1)).reshape(T, OC, IC)
    w_taps = jnp.pad(w_taps, ((0, 0), (0, OCp - OC), (0, ICp - IC)))
    w_taps = w_taps.astype(jnp.bfloat16)

    b_col = jnp.pad(bias, (0, OCp - OC)).reshape(OCp, 1).astype(jnp.float32)
    m_col = jnp.pad(drop_mask, ((0, 0), (0, OCp - OC)))
    m_col = m_col.reshape(N, OCp, 1).astype(jnp.float32)

    # Whole-batch slabs live in VMEM (double-buffered); make sure they fit on the
    # smallest generation (v7x: 64 MiB/TC).
    est_vmem = (2 * ICp * FLp * 2 + 2 * OCp * Lp * 4
                + 2 * T * OCp * ICp * 2 + 4 * OCp * 4)
    try:
        vmem_cap = int(getattr(pltpu.get_tpu_info(), "vmem_capacity_bytes",
                               64 * 1024 * 1024))
    except Exception:
        vmem_cap = 64 * 1024 * 1024
    if est_vmem > vmem_cap // 2:
        # TODO(synk): tile the flattened spatial axis with halo'd manual DMA for
        # large D*H*W instead of whole-batch VMEM residency.
        raise NotImplementedError(
            "per-batch input/output slab too large for single-step VMEM residency")

    kernel = functools.partial(_conv3d_dropout_kernel,
                               taps=taps, HW=HW, W=W, Lp=Lp)

    out_flat = pl.pallas_call(
        kernel,
        out_shape=jax.ShapeDtypeStruct((N, OCp, Lp), jnp.float32),
        grid_spec=pltpu.PrefetchScalarGridSpec(
            num_scalar_prefetch=0,
            grid=(N,),
            in_specs=[
                pl.BlockSpec((None, ICp, FLp), lambda n: (n, 0, 0)),
                pl.BlockSpec((T, OCp, ICp), lambda n: (0, 0, 0)),
                pl.BlockSpec((OCp, 1), lambda n: (0, 0)),
                pl.BlockSpec((None, OCp, 1), lambda n: (n, 0, 0)),
            ],
            out_specs=pl.BlockSpec((None, OCp, Lp), lambda n: (n, 0, 0)),
        ),
        compiler_params=pltpu.CompilerParams(
            dimension_semantics=("parallel",),
        ),
    )(xf, w_taps, b_col, m_col)

    # (N, OCp, Lp) -> strip OC pad + wrap-around rows -> NCDHW (no transpose).
    out = out_flat[:, :OC, :L].reshape(N, OC, OD, H, W)[:, :, :, :OH, :OW]
    return out


if __name__ == "__main__":
    key = jax.random.PRNGKey(0)
    k_x, k_w, k_b, k_drop = jax.random.split(key, 4)

    # Small shapes consistent with nn.Conv3d(IC=4, OC=8, kernel=3)
    N, IC, D, H, W = 2, 4, 8, 8, 8
    OC, kD, kH, kW = 8, 3, 3, 3
    dropout_rate = 0.5

    x = jax.random.normal(k_x, (N, IC, D, H, W), dtype=jnp.float32)

    # Deterministic init mimicking PyTorch Conv3d defaults
    # (uniform(-1/sqrt(fan_in), 1/sqrt(fan_in))).
    fan_in = IC * kD * kH * kW
    bound = 1.0 / (fan_in ** 0.5)
    weight = jax.random.uniform(k_w, (OC, IC, kD, kH, kW),
                                minval=-bound, maxval=bound, dtype=jnp.float32)
    bias = jax.random.uniform(k_b, (OC,), minval=-bound, maxval=bound,
                              dtype=jnp.float32)

    # Dropout3d: per-(n, c) channel keep mask scaled by 1/(1-p).
    keep = jax.random.bernoulli(k_drop, p=1.0 - dropout_rate, shape=(N, OC))
    drop_mask = keep.astype(jnp.float32) / (1.0 - dropout_rate)

    out = conv3d_dropout(x, weight, bias, drop_mask, kD=kD, kH=kH, kW=kW)
    out = jax.block_until_ready(out)

    # Reference: XLA conv on bf16-quantized operands (kernel feeds the MXU bf16
    # operands with f32 accumulation), bias + identical channel mask.
    xq = x.astype(jnp.bfloat16).astype(jnp.float32)
    wq = weight.astype(jnp.bfloat16).astype(jnp.float32)
    ref = jax.lax.conv_general_dilated(
        xq, wq, window_strides=(1, 1, 1), padding="VALID",
        dimension_numbers=("NCDHW", "OIDHW", "NCDHW"),
        precision=jax.lax.Precision.HIGHEST)
    ref = ref + bias.reshape(1, OC, 1, 1, 1)
    ref = ref * drop_mask.reshape(N, OC, 1, 1, 1)

    assert out.shape == (N, OC, D - kD + 1, H - kH + 1, W - kW + 1)
    assert jnp.allclose(out, ref, atol=2e-3, rtol=2e-3)

    print("KERNEL_OK")
</pallas_src>

<mosaic_0001>
module attributes {stable_mosaic.version = 11 : i64} {
  func.func @_conv3d_dropout_kernel(%arg0: i32, %arg1: memref<1x8x640xbf16, #tpu.memory_space<vmem>>, %arg2: memref<27x8x8xbf16, #tpu.memory_space<vmem>>, %arg3: memref<8x1xf32, #tpu.memory_space<vmem>>, %arg4: memref<1x8x1xf32, #tpu.memory_space<vmem>>, %arg5: memref<1x8x384xf32, #tpu.memory_space<vmem>>) attributes {dimension_semantics = [#tpu.dimension_semantics<parallel>], iteration_bounds = array<i64: 2>, scalar_prefetch = 0 : i64, scratch_operands = 0 : i64, tpu.core_type = #tpu.core_type<tc>, window_params = [{transform_indices = @transform_0, window_bounds = array<i64: 1, 8, 640>}, {pipeline_mode = #tpu.pipeline_mode<synchronous>, transform_indices = @transform_1, window_bounds = array<i64: 27, 8, 8>}, {pipeline_mode = #tpu.pipeline_mode<synchronous>, transform_indices = @transform_2, window_bounds = array<i64: 8, 1>}, {transform_indices = @transform_3, window_bounds = array<i64: 1, 8, 1>}, {transform_indices = @transform_4, window_bounds = array<i64: 1, 8, 384>}]} {
    %cst = arith.constant 0.000000e+00 : f32
    %0 = vector.broadcast %cst : f32 to vector<8x384xf32>
    %c0 = arith.constant 0 : index
    %c0_0 = arith.constant 0 : index
    %c0_1 = arith.constant 0 : index
    %1 = vector.load %arg1[%c0, %c0_0, %c0_1] : memref<1x8x640xbf16, #tpu.memory_space<vmem>>, vector<1x8x384xbf16>
    %2 = vector.shape_cast %1 : vector<1x8x384xbf16> to vector<8x384xbf16>
    %c0_2 = arith.constant 0 : index
    %c0_3 = arith.constant 0 : index
    %c0_4 = arith.constant 0 : index
    %3 = vector.load %arg2[%c0_2, %c0_3, %c0_4] : memref<27x8x8xbf16, #tpu.memory_space<vmem>>, vector<1x8x8xbf16>
    %4 = vector.shape_cast %3 : vector<1x8x8xbf16> to vector<8x8xbf16>
    %cst_5 = arith.constant dense<0.000000e+00> : vector<8x384xf32>
    %5 = tpu.matmul %4, %2, %cst_5 {dimension_numbers = #tpu.dot_dimension_numbers<[1], [0], [0], [1], [0, 0, 1, 1], [], []>} : vector<8x8xbf16>, vector<8x384xbf16>, vector<8x384xf32> -> vector<8x384xf32>
    %6 = arith.addf %0, %5 : vector<8x384xf32>
    %c0_6 = arith.constant 0 : index
    %c0_7 = arith.constant 0 : index
    %c1 = arith.constant 1 : index
    %7 = vector.load %arg1[%c0_6, %c0_7, %c1] : memref<1x8x640xbf16, #tpu.memory_space<vmem>>, vector<1x8x384xbf16>
    %8 = vector.shape_cast %7 : vector<1x8x384xbf16> to vector<8x384xbf16>
    %c1_8 = arith.constant 1 : index
    %c0_9 = arith.constant 0 : index
    %c0_10 = arith.constant 0 : index
    %9 = vector.load %arg2[%c1_8, %c0_9, %c0_10] : memref<27x8x8xbf16, #tpu.memory_space<vmem>>, vector<1x8x8xbf16>
    %10 = vector.shape_cast %9 : vector<1x8x8xbf16> to vector<8x8xbf16>
    %cst_11 = arith.constant dense<0.000000e+00> : vector<8x384xf32>
    %11 = tpu.matmul %10, %8, %cst_11 {dimension_numbers = #tpu.dot_dimension_numbers<[1], [0], [0], [1], [0, 0, 1, 1], [], []>} : vector<8x8xbf16>, vector<8x384xbf16>, vector<8x384xf32> -> vector<8x384xf32>
    %12 = arith.addf %6, %11 : vector<8x384xf32>
    %c0_12 = arith.constant 0 : index
    %c0_13 = arith.constant 0 : index
    %c2 = arith.constant 2 : index
    %13 = vector.load %arg1[%c0_12, %c0_13, %c2] : memref<1x8x640xbf16, #tpu.memory_space<vmem>>, vector<1x8x384xbf16>
    %14 = vector.shape_cast %13 : vector<1x8x384xbf16> to vector<8x384xbf16>
    %c2_14 = arith.constant 2 : index
    %c0_15 = arith.constant 0 : index
    %c0_16 = arith.constant 0 : index
    %15 = vector.load %arg2[%c2_14, %c0_15, %c0_16] : memref<27x8x8xbf16, #tpu.memory_space<vmem>>, vector<1x8x8xbf16>
    %16 = vector.shape_cast %15 : vector<1x8x8xbf16> to vector<8x8xbf16>
    %cst_17 = arith.constant dense<0.000000e+00> : vector<8x384xf32>
    %17 = tpu.matmul %16, %14, %cst_17 {dimension_numbers = #tpu.dot_dimension_numbers<[1], [0], [0], [1], [0, 0, 1, 1], [], []>} : vector<8x8xbf16>, vector<8x384xbf16>, vector<8x384xf32> -> vector<8x384xf32>
    %18 = arith.addf %12, %17 : vector<8x384xf32>
    %c0_18 = arith.constant 0 : index
    %c0_19 = arith.constant 0 : index
    %c8 = arith.constant 8 : index
    %19 = vector.load %arg1[%c0_18, %c0_19, %c8] : memref<1x8x640xbf16, #tpu.memory_space<vmem>>, vector<1x8x384xbf16>
    %20 = vector.shape_cast %19 : vector<1x8x384xbf16> to vector<8x384xbf16>
    %c3 = arith.constant 3 : index
    %c0_20 = arith.constant 0 : index
    %c0_21 = arith.constant 0 : index
    %21 = vector.load %arg2[%c3, %c0_20, %c0_21] : memref<27x8x8xbf16, #tpu.memory_space<vmem>>, vector<1x8x8xbf16>
    %22 = vector.shape_cast %21 : vector<1x8x8xbf16> to vector<8x8xbf16>
    %cst_22 = arith.constant dense<0.000000e+00> : vector<8x384xf32>
    %23 = tpu.matmul %22, %20, %cst_22 {dimension_numbers = #tpu.dot_dimension_numbers<[1], [0], [0], [1], [0, 0, 1, 1], [], []>} : vector<8x8xbf16>, vector<8x384xbf16>, vector<8x384xf32> -> vector<8x384xf32>
    %24 = arith.addf %18, %23 : vector<8x384xf32>
    %c0_23 = arith.constant 0 : index
    %c0_24 = arith.constant 0 : index
    %c9 = arith.constant 9 : index
    %25 = vector.load %arg1[%c0_23, %c0_24, %c9] : memref<1x8x640xbf16, #tpu.memory_space<vmem>>, vector<1x8x384xbf16>
    %26 = vector.shape_cast %25 : vector<1x8x384xbf16> to vector<8x384xbf16>
    %c4 = arith.constant 4 : index
    %c0_25 = arith.constant 0 : index
    %c0_26 = arith.constant 0 : index
    %27 = vector.load %arg2[%c4, %c0_25, %c0_26] : memref<27x8x8xbf16, #tpu.memory_space<vmem>>, vector<1x8x8xbf16>
    %28 = vector.shape_cast %27 : vector<1x8x8xbf16> to vector<8x8xbf16>
    %cst_27 = arith.constant dense<0.000000e+00> : vector<8x384xf32>
    %29 = tpu.matmul %28, %26, %cst_27 {dimension_numbers = #tpu.dot_dimension_numbers<[1], [0], [0], [1], [0, 0, 1, 1], [], []>} : vector<8x8xbf16>, vector<8x384xbf16>, vector<8x384xf32> -> vector<8x384xf32>
    %30 = arith.addf %24, %29 : vector<8x384xf32>
    %c0_28 = arith.constant 0 : index
    %c0_29 = arith.constant 0 : index
    %c10 = arith.constant 10 : index
    %31 = vector.load %arg1[%c0_28, %c0_29, %c10] : memref<1x8x640xbf16, #tpu.memory_space<vmem>>, vector<1x8x384xbf16>
    %32 = vector.shape_cast %31 : vector<1x8x384xbf16> to vector<8x384xbf16>
    %c5 = arith.constant 5 : index
    %c0_30 = arith.constant 0 : index
    %c0_31 = arith.constant 0 : index
    %33 = vector.load %arg2[%c5, %c0_30, %c0_31] : memref<27x8x8xbf16, #tpu.memory_space<vmem>>, vector<1x8x8xbf16>
    %34 = vector.shape_cast %33 : vector<1x8x8xbf16> to vector<8x8xbf16>
    %cst_32 = arith.constant dense<0.000000e+00> : vector<8x384xf32>
    %35 = tpu.matmul %34, %32, %cst_32 {dimension_numbers = #tpu.dot_dimension_numbers<[1], [0], [0], [1], [0, 0, 1, 1], [], []>} : vector<8x8xbf16>, vector<8x384xbf16>, vector<8x384xf32> -> vector<8x384xf32>
    %36 = arith.addf %30, %35 : vector<8x384xf32>
    %c0_33 = arith.constant 0 : index
    %c0_34 = arith.constant 0 : index
    %c16 = arith.constant 16 : index
    %37 = vector.load %arg1[%c0_33, %c0_34, %c16] : memref<1x8x640xbf16, #tpu.memory_space<vmem>>, vector<1x8x384xbf16>
    %38 = vector.shape_cast %37 : vector<1x8x384xbf16> to vector<8x384xbf16>
    %c6 = arith.constant 6 : index
    %c0_35 = arith.constant 0 : index
    %c0_36 = arith.constant 0 : index
    %39 = vector.load %arg2[%c6, %c0_35, %c0_36] : memref<27x8x8xbf16, #tpu.memory_space<vmem>>, vector<1x8x8xbf16>
    %40 = vector.shape_cast %39 : vector<1x8x8xbf16> to vector<8x8xbf16>
    %cst_37 = arith.constant dense<0.000000e+00> : vector<8x384xf32>
    %41 = tpu.matmul %40, %38, %cst_37 {dimension_numbers = #tpu.dot_dimension_numbers<[1], [0], [0], [1], [0, 0, 1, 1], [], []>} : vector<8x8xbf16>, vector<8x384xbf16>, vector<8x384xf32> -> vector<8x384xf32>
    %42 = arith.addf %36, %41 : vector<8x384xf32>
    %c0_38 = arith.constant 0 : index
    %c0_39 = arith.constant 0 : index
    %c17 = arith.constant 17 : index
    %43 = vector.load %arg1[%c0_38, %c0_39, %c17] : memref<1x8x640xbf16, #tpu.memory_space<vmem>>, vector<1x8x384xbf16>
    %44 = vector.shape_cast %43 : vector<1x8x384xbf16> to vector<8x384xbf16>
    %c7 = arith.constant 7 : index
    %c0_40 = arith.constant 0 : index
    %c0_41 = arith.constant 0 : index
    %45 = vector.load %arg2[%c7, %c0_40, %c0_41] : memref<27x8x8xbf16, #tpu.memory_space<vmem>>, vector<1x8x8xbf16>
    %46 = vector.shape_cast %45 : vector<1x8x8xbf16> to vector<8x8xbf16>
    %cst_42 = arith.constant dense<0.000000e+00> : vector<8x384xf32>
    %47 = tpu.matmul %46, %44, %cst_42 {dimension_numbers = #tpu.dot_dimension_numbers<[1], [0], [0], [1], [0, 0, 1, 1], [], []>} : vector<8x8xbf16>, vector<8x384xbf16>, vector<8x384xf32> -> vector<8x384xf32>
    %48 = arith.addf %42, %47 : vector<8x384xf32>
    %c0_43 = arith.constant 0 : index
    %c0_44 = arith.constant 0 : index
    %c18 = arith.constant 18 : index
    %49 = vector.load %arg1[%c0_43, %c0_44, %c18] : memref<1x8x640xbf16, #tpu.memory_space<vmem>>, vector<1x8x384xbf16>
    %50 = vector.shape_cast %49 : vector<1x8x384xbf16> to vector<8x384xbf16>
    %c8_45 = arith.constant 8 : index
    %c0_46 = arith.constant 0 : index
    %c0_47 = arith.constant 0 : index
    %51 = vector.load %arg2[%c8_45, %c0_46, %c0_47] : memref<27x8x8xbf16, #tpu.memory_space<vmem>>, vector<1x8x8xbf16>
    %52 = vector.shape_cast %51 : vector<1x8x8xbf16> to vector<8x8xbf16>
    %cst_48 = arith.constant dense<0.000000e+00> : vector<8x384xf32>
    %53 = tpu.matmul %52, %50, %cst_48 {dimension_numbers = #tpu.dot_dimension_numbers<[1], [0], [0], [1], [0, 0, 1, 1], [], []>} : vector<8x8xbf16>, vector<8x384xbf16>, vector<8x384xf32> -> vector<8x384xf32>
    %54 = arith.addf %48, %53 : vector<8x384xf32>
    %c0_49 = arith.constant 0 : index
    %c0_50 = arith.constant 0 : index
    %c64 = arith.constant 64 : index
    %55 = vector.load %arg1[%c0_49, %c0_50, %c64] : memref<1x8x640xbf16, #tpu.memory_space<vmem>>, vector<1x8x384xbf16>
    %56 = vector.shape_cast %55 : vector<1x8x384xbf16> to vector<8x384xbf16>
    %c9_51 = arith.constant 9 : index
    %c0_52 = arith.constant 0 : index
    %c0_53 = arith.constant 0 : index
    %57 = vector.load %arg2[%c9_51, %c0_52, %c0_53] : memref<27x8x8xbf16, #tpu.memory_space<vmem>>, vector<1x8x8xbf16>
    %58 = vector.shape_cast %57 : vector<1x8x8xbf16> to vector<8x8xbf16>
    %cst_54 = arith.constant dense<0.000000e+00> : vector<8x384xf32>
    %59 = tpu.matmul %58, %56, %cst_54 {dimension_numbers = #tpu.dot_dimension_numbers<[1], [0], [0], [1], [0, 0, 1, 1], [], []>} : vector<8x8xbf16>, vector<8x384xbf16>, vector<8x384xf32> -> vector<8x384xf32>
    %60 = arith.addf %54, %59 : vector<8x384xf32>
    %c0_55 = arith.constant 0 : index
    %c0_56 = arith.constant 0 : index
    %c65 = arith.constant 65 : index
    %61 = vector.load %arg1[%c0_55, %c0_56, %c65] : memref<1x8x640xbf16, #tpu.memory_space<vmem>>, vector<1x8x384xbf16>
    %62 = vector.shape_cast %61 : vector<1x8x384xbf16> to vector<8x384xbf16>
    %c10_57 = arith.constant 10 : index
    %c0_58 = arith.constant 0 : index
    %c0_59 = arith.constant 0 : index
    %63 = vector.load %arg2[%c10_57, %c0_58, %c0_59] : memref<27x8x8xbf16, #tpu.memory_space<vmem>>, vector<1x8x8xbf16>
    %64 = vector.shape_cast %63 : vector<1x8x8xbf16> to vector<8x8xbf16>
    %cst_60 = arith.constant dense<0.000000e+00> : vector<8x384xf32>
    %65 = tpu.matmul %64, %62, %cst_60 {dimension_numbers = #tpu.dot_dimension_numbers<[1], [0], [0], [1], [0, 0, 1, 1], [], []>} : vector<8x8xbf16>, vector<8x384xbf16>, vector<8x384xf32> -> vector<8x384xf32>
    %66 = arith.addf %60, %65 : vector<8x384xf32>
    %c0_61 = arith.constant 0 : index
    %c0_62 = arith.constant 0 : index
    %c66 = arith.constant 66 : index
    %67 = vector.load %arg1[%c0_61, %c0_62, %c66] : memref<1x8x640xbf16, #tpu.memory_space<vmem>>, vector<1x8x384xbf16>
    %68 = vector.shape_cast %67 : vector<1x8x384xbf16> to vector<8x384xbf16>
    %c11 = arith.constant 11 : index
    %c0_63 = arith.constant 0 : index
    %c0_64 = arith.constant 0 : index
    %69 = vector.load %arg2[%c11, %c0_63, %c0_64] : memref<27x8x8xbf16, #tpu.memory_space<vmem>>, vector<1x8x8xbf16>
    %70 = vector.shape_cast %69 : vector<1x8x8xbf16> to vector<8x8xbf16>
    %cst_65 = arith.constant dense<0.000000e+00> : vector<8x384xf32>
    %71 = tpu.matmul %70, %68, %cst_65 {dimension_numbers = #tpu.dot_dimension_numbers<[1], [0], [0], [1], [0, 0, 1, 1], [], []>} : vector<8x8xbf16>, vector<8x384xbf16>, vector<8x384xf32> -> vector<8x384xf32>
    %72 = arith.addf %66, %71 : vector<8x384xf32>
    %c0_66 = arith.constant 0 : index
    %c0_67 = arith.constant 0 : index
    %c72 = arith.constant 72 : index
    %73 = vector.load %arg1[%c0_66, %c0_67, %c72] : memref<1x8x640xbf16, #tpu.memory_space<vmem>>, vector<1x8x384xbf16>
    %74 = vector.shape_cast %73 : vector<1x8x384xbf16> to vector<8x384xbf16>
    %c12 = arith.constant 12 : index
    %c0_68 = arith.constant 0 : index
    %c0_69 = arith.constant 0 : index
    %75 = vector.load %arg2[%c12, %c0_68, %c0_69] : memref<27x8x8xbf16, #tpu.memory_space<vmem>>, vector<1x8x8xbf16>
    %76 = vector.shape_cast %75 : vector<1x8x8xbf16> to vector<8x8xbf16>
    %cst_70 = arith.constant dense<0.000000e+00> : vector<8x384xf32>
    %77 = tpu.matmul %76, %74, %cst_70 {dimension_numbers = #tpu.dot_dimension_numbers<[1], [0], [0], [1], [0, 0, 1, 1], [], []>} : vector<8x8xbf16>, vector<8x384xbf16>, vector<8x384xf32> -> vector<8x384xf32>
    %78 = arith.addf %72, %77 : vector<8x384xf32>
    %c0_71 = arith.constant 0 : index
    %c0_72 = arith.constant 0 : index
    %c73 = arith.constant 73 : index
    %79 = vector.load %arg1[%c0_71, %c0_72, %c73] : memref<1x8x640xbf16, #tpu.memory_space<vmem>>, vector<1x8x384xbf16>
    %80 = vector.shape_cast %79 : vector<1x8x384xbf16> to vector<8x384xbf16>
    %c13 = arith.constant 13 : index
    %c0_73 = arith.constant 0 : index
    %c0_74 = arith.constant 0 : index
    %81 = vector.load %arg2[%c13, %c0_73, %c0_74] : memref<27x8x8xbf16, #tpu.memory_space<vmem>>, vector<1x8x8xbf16>
    %82 = vector.shape_cast %81 : vector<1x8x8xbf16> to vector<8x8xbf16>
    %cst_75 = arith.constant dense<0.000000e+00> : vector<8x384xf32>
    %83 = tpu.matmul %82, %80, %cst_75 {dimension_numbers = #tpu.dot_dimension_numbers<[1], [0], [0], [1], [0, 0, 1, 1], [], []>} : vector<8x8xbf16>, vector<8x384xbf16>, vector<8x384xf32> -> vector<8x384xf32>
    %84 = arith.addf %78, %83 : vector<8x384xf32>
    %c0_76 = arith.constant 0 : index
    %c0_77 = arith.constant 0 : index
    %c74 = arith.constant 74 : index
    %85 = vector.load %arg1[%c0_76, %c0_77, %c74] : memref<1x8x640xbf16, #tpu.memory_space<vmem>>, vector<1x8x384xbf16>
    %86 = vector.shape_cast %85 : vector<1x8x384xbf16> to vector<8x384xbf16>
    %c14 = arith.constant 14 : index
    %c0_78 = arith.constant 0 : index
    %c0_79 = arith.constant 0 : index
    %87 = vector.load %arg2[%c14, %c0_78, %c0_79] : memref<27x8x8xbf16, #tpu.memory_space<vmem>>, vector<1x8x8xbf16>
    %88 = vector.shape_cast %87 : vector<1x8x8xbf16> to vector<8x8xbf16>
    %cst_80 = arith.constant dense<0.000000e+00> : vector<8x384xf32>
    %89 = tpu.matmul %88, %86, %cst_80 {dimension_numbers = #tpu.dot_dimension_numbers<[1], [0], [0], [1], [0, 0, 1, 1], [], []>} : vector<8x8xbf16>, vector<8x384xbf16>, vector<8x384xf32> -> vector<8x384xf32>
    %90 = arith.addf %84, %89 : vector<8x384xf32>
    %c0_81 = arith.constant 0 : index
    %c0_82 = arith.constant 0 : index
    %c80 = arith.constant 80 : index
    %91 = vector.load %arg1[%c0_81, %c0_82, %c80] : memref<1x8x640xbf16, #tpu.memory_space<vmem>>, vector<1x8x384xbf16>
    %92 = vector.shape_cast %91 : vector<1x8x384xbf16> to vector<8x384xbf16>
    %c15 = arith.constant 15 : index
    %c0_83 = arith.constant 0 : index
    %c0_84 = arith.constant 0 : index
    %93 = vector.load %arg2[%c15, %c0_83, %c0_84] : memref<27x8x8xbf16, #tpu.memory_space<vmem>>, vector<1x8x8xbf16>
    %94 = vector.shape_cast %93 : vector<1x8x8xbf16> to vector<8x8xbf16>
    %cst_85 = arith.constant dense<0.000000e+00> : vector<8x384xf32>
    %95 = tpu.matmul %94, %92, %cst_85 {dimension_numbers = #tpu.dot_dimension_numbers<[1], [0], [0], [1], [0, 0, 1, 1], [], []>} : vector<8x8xbf16>, vector<8x384xbf16>, vector<8x384xf32> -> vector<8x384xf32>
    %96 = arith.addf %90, %95 : vector<8x384xf32>
    %c0_86 = arith.constant 0 : index
    %c0_87 = arith.constant 0 : index
    %c81 = arith.constant 81 : index
    %97 = vector.load %arg1[%c0_86, %c0_87, %c81] : memref<1x8x640xbf16, #tpu.memory_space<vmem>>, vector<1x8x384xbf16>
    %98 = vector.shape_cast %97 : vector<1x8x384xbf16> to vector<8x384xbf16>
    %c16_88 = arith.constant 16 : index
    %c0_89 = arith.constant 0 : index
    %c0_90 = arith.constant 0 : index
    %99 = vector.load %arg2[%c16_88, %c0_89, %c0_90] : memref<27x8x8xbf16, #tpu.memory_space<vmem>>, vector<1x8x8xbf16>
    %100 = vector.shape_cast %99 : vector<1x8x8xbf16> to vector<8x8xbf16>
    %cst_91 = arith.constant dense<0.000000e+00> : vector<8x384xf32>
    %101 = tpu.matmul %100, %98, %cst_91 {dimension_numbers = #tpu.dot_dimension_numbers<[1], [0], [0], [1], [0, 0, 1, 1], [], []>} : vector<8x8xbf16>, vector<8x384xbf16>, vector<8x384xf32> -> vector<8x384xf32>
    %102 = arith.addf %96, %101 : vector<8x384xf32>
    %c0_92 = arith.constant 0 : index
    %c0_93 = arith.constant 0 : index
    %c82 = arith.constant 82 : index
    %103 = vector.load %arg1[%c0_92, %c0_93, %c82] : memref<1x8x640xbf16, #tpu.memory_space<vmem>>, vector<1x8x384xbf16>
    %104 = vector.shape_cast %103 : vector<1x8x384xbf16> to vector<8x384xbf16>
    %c17_94 = arith.constant 17 : index
    %c0_95 = arith.constant 0 : index
    %c0_96 = arith.constant 0 : index
    %105 = vector.load %arg2[%c17_94, %c0_95, %c0_96] : memref<27x8x8xbf16, #tpu.memory_space<vmem>>, vector<1x8x8xbf16>
    %106 = vector.shape_cast %105 : vector<1x8x8xbf16> to vector<8x8xbf16>
    %cst_97 = arith.constant dense<0.000000e+00> : vector<8x384xf32>
    %107 = tpu.matmul %106, %104, %cst_97 {dimension_numbers = #tpu.dot_dimension_numbers<[1], [0], [0], [1], [0, 0, 1, 1], [], []>} : vector<8x8xbf16>, vector<8x384xbf16>, vector<8x384xf32> -> vector<8x384xf32>
    %108 = arith.addf %102, %107 : vector<8x384xf32>
    %c0_98 = arith.constant 0 : index
    %c0_99 = arith.constant 0 : index
    %c128 = arith.constant 128 : index
    %109 = vector.load %arg1[%c0_98, %c0_99, %c128] : memref<1x8x640xbf16, #tpu.memory_space<vmem>>, vector<1x8x384xbf16>
    %110 = vector.shape_cast %109 : vector<1x8x384xbf16> to vector<8x384xbf16>
    %c18_100 = arith.constant 18 : index
    %c0_101 = arith.constant 0 : index
    %c0_102 = arith.constant 0 : index
    %111 = vector.load %arg2[%c18_100, %c0_101, %c0_102] : memref<27x8x8xbf16, #tpu.memory_space<vmem>>, vector<1x8x8xbf16>
    %112 = vector.shape_cast %111 : vector<1x8x8xbf16> to vector<8x8xbf16>
    %cst_103 = arith.constant dense<0.000000e+00> : vector<8x384xf32>
    %113 = tpu.matmul %112, %110, %cst_103 {dimension_numbers = #tpu.dot_dimension_numbers<[1], [0], [0], [1], [0, 0, 1, 1], [], []>} : vector<8x8xbf16>, vector<8x384xbf16>, vector<8x384xf32> -> vector<8x384xf32>
    %114 = arith.addf %108, %113 : vector<8x384xf32>
    %c0_104 = arith.constant 0 : index
    %c0_105 = arith.constant 0 : index
    %c129 = arith.constant 129 : index
    %115 = vector.load %arg1[%c0_104, %c0_105, %c129] : memref<1x8x640xbf16, #tpu.memory_space<vmem>>, vector<1x8x384xbf16>
    %116 = vector.shape_cast %115 : vector<1x8x384xbf16> to vector<8x384xbf16>
    %c19 = arith.constant 19 : index
    %c0_106 = arith.constant 0 : index
    %c0_107 = arith.constant 0 : index
    %117 = vector.load %arg2[%c19, %c0_106, %c0_107] : memref<27x8x8xbf16, #tpu.memory_space<vmem>>, vector<1x8x8xbf16>
    %118 = vector.shape_cast %117 : vector<1x8x8xbf16> to vector<8x8xbf16>
    %cst_108 = arith.constant dense<0.000000e+00> : vector<8x384xf32>
    %119 = tpu.matmul %118, %116, %cst_108 {dimension_numbers = #tpu.dot_dimension_numbers<[1], [0], [0], [1], [0, 0, 1, 1], [], []>} : vector<8x8xbf16>, vector<8x384xbf16>, vector<8x384xf32> -> vector<8x384xf32>
    %120 = arith.addf %114, %119 : vector<8x384xf32>
    %c0_109 = arith.constant 0 : index
    %c0_110 = arith.constant 0 : index
    %c130 = arith.constant 130 : index
    %121 = vector.load %arg1[%c0_109, %c0_110, %c130] : memref<1x8x640xbf16, #tpu.memory_space<vmem>>, vector<1x8x384xbf16>
    %122 = vector.shape_cast %121 : vector<1x8x384xbf16> to vector<8x384xbf16>
    %c20 = arith.constant 20 : index
    %c0_111 = arith.constant 0 : index
    %c0_112 = arith.constant 0 : index
    %123 = vector.load %arg2[%c20, %c0_111, %c0_112] : memref<27x8x8xbf16, #tpu.memory_space<vmem>>, vector<1x8x8xbf16>
    %124 = vector.shape_cast %123 : vector<1x8x8xbf16> to vector<8x8xbf16>
    %cst_113 = arith.constant dense<0.000000e+00> : vector<8x384xf32>
    %125 = tpu.matmul %124, %122, %cst_113 {dimension_numbers = #tpu.dot_dimension_numbers<[1], [0], [0], [1], [0, 0, 1, 1], [], []>} : vector<8x8xbf16>, vector<8x384xbf16>, vector<8x384xf32> -> vector<8x384xf32>
    %126 = arith.addf %120, %125 : vector<8x384xf32>
    %c0_114 = arith.constant 0 : index
    %c0_115 = arith.constant 0 : index
    %c136 = arith.constant 136 : index
    %127 = vector.load %arg1[%c0_114, %c0_115, %c136] : memref<1x8x640xbf16, #tpu.memory_space<vmem>>, vector<1x8x384xbf16>
    %128 = vector.shape_cast %127 : vector<1x8x384xbf16> to vector<8x384xbf16>
    %c21 = arith.constant 21 : index
    %c0_116 = arith.constant 0 : index
    %c0_117 = arith.constant 0 : index
    %129 = vector.load %arg2[%c21, %c0_116, %c0_117] : memref<27x8x8xbf16, #tpu.memory_space<vmem>>, vector<1x8x8xbf16>
    %130 = vector.shape_cast %129 : vector<1x8x8xbf16> to vector<8x8xbf16>
    %cst_118 = arith.constant dense<0.000000e+00> : vector<8x384xf32>
    %131 = tpu.matmul %130, %128, %cst_118 {dimension_numbers = #tpu.dot_dimension_numbers<[1], [0], [0], [1], [0, 0, 1, 1], [], []>} : vector<8x8xbf16>, vector<8x384xbf16>, vector<8x384xf32> -> vector<8x384xf32>
    %132 = arith.addf %126, %131 : vector<8x384xf32>
    %c0_119 = arith.constant 0 : index
    %c0_120 = arith.constant 0 : index
    %c137 = arith.constant 137 : index
    %133 = vector.load %arg1[%c0_119, %c0_120, %c137] : memref<1x8x640xbf16, #tpu.memory_space<vmem>>, vector<1x8x384xbf16>
    %134 = vector.shape_cast %133 : vector<1x8x384xbf16> to vector<8x384xbf16>
    %c22 = arith.constant 22 : index
    %c0_121 = arith.constant 0 : index
    %c0_122 = arith.constant 0 : index
    %135 = vector.load %arg2[%c22, %c0_121, %c0_122] : memref<27x8x8xbf16, #tpu.memory_space<vmem>>, vector<1x8x8xbf16>
    %136 = vector.shape_cast %135 : vector<1x8x8xbf16> to vector<8x8xbf16>
    %cst_123 = arith.constant dense<0.000000e+00> : vector<8x384xf32>
    %137 = tpu.matmul %136, %134, %cst_123 {dimension_numbers = #tpu.dot_dimension_numbers<[1], [0], [0], [1], [0, 0, 1, 1], [], []>} : vector<8x8xbf16>, vector<8x384xbf16>, vector<8x384xf32> -> vector<8x384xf32>
    %138 = arith.addf %132, %137 : vector<8x384xf32>
    %c0_124 = arith.constant 0 : index
    %c0_125 = arith.constant 0 : index
    %c138 = arith.constant 138 : index
    %139 = vector.load %arg1[%c0_124, %c0_125, %c138] : memref<1x8x640xbf16, #tpu.memory_space<vmem>>, vector<1x8x384xbf16>
    %140 = vector.shape_cast %139 : vector<1x8x384xbf16> to vector<8x384xbf16>
    %c23 = arith.constant 23 : index
    %c0_126 = arith.constant 0 : index
    %c0_127 = arith.constant 0 : index
    %141 = vector.load %arg2[%c23, %c0_126, %c0_127] : memref<27x8x8xbf16, #tpu.memory_space<vmem>>, vector<1x8x8xbf16>
    %142 = vector.shape_cast %141 : vector<1x8x8xbf16> to vector<8x8xbf16>
    %cst_128 = arith.constant dense<0.000000e+00> : vector<8x384xf32>
    %143 = tpu.matmul %142, %140, %cst_128 {dimension_numbers = #tpu.dot_dimension_numbers<[1], [0], [0], [1], [0, 0, 1, 1], [], []>} : vector<8x8xbf16>, vector<8x384xbf16>, vector<8x384xf32> -> vector<8x384xf32>
    %144 = arith.addf %138, %143 : vector<8x384xf32>
    %c0_129 = arith.constant 0 : index
    %c0_130 = arith.constant 0 : index
    %c144 = arith.constant 144 : index
    %145 = vector.load %arg1[%c0_129, %c0_130, %c144] : memref<1x8x640xbf16, #tpu.memory_space<vmem>>, vector<1x8x384xbf16>
    %146 = vector.shape_cast %145 : vector<1x8x384xbf16> to vector<8x384xbf16>
    %c24 = arith.constant 24 : index
    %c0_131 = arith.constant 0 : index
    %c0_132 = arith.constant 0 : index
    %147 = vector.load %arg2[%c24, %c0_131, %c0_132] : memref<27x8x8xbf16, #tpu.memory_space<vmem>>, vector<1x8x8xbf16>
    %148 = vector.shape_cast %147 : vector<1x8x8xbf16> to vector<8x8xbf16>
    %cst_133 = arith.constant dense<0.000000e+00> : vector<8x384xf32>
    %149 = tpu.matmul %148, %146, %cst_133 {dimension_numbers = #tpu.dot_dimension_numbers<[1], [0], [0], [1], [0, 0, 1, 1], [], []>} : vector<8x8xbf16>, vector<8x384xbf16>, vector<8x384xf32> -> vector<8x384xf32>
    %150 = arith.addf %144, %149 : vector<8x384xf32>
    %c0_134 = arith.constant 0 : index
    %c0_135 = arith.constant 0 : index
    %c145 = arith.constant 145 : index
    %151 = vector.load %arg1[%c0_134, %c0_135, %c145] : memref<1x8x640xbf16, #tpu.memory_space<vmem>>, vector<1x8x384xbf16>
    %152 = vector.shape_cast %151 : vector<1x8x384xbf16> to vector<8x384xbf16>
    %c25 = arith.constant 25 : index
    %c0_136 = arith.constant 0 : index
    %c0_137 = arith.constant 0 : index
    %153 = vector.load %arg2[%c25, %c0_136, %c0_137] : memref<27x8x8xbf16, #tpu.memory_space<vmem>>, vector<1x8x8xbf16>
    %154 = vector.shape_cast %153 : vector<1x8x8xbf16> to vector<8x8xbf16>
    %cst_138 = arith.constant dense<0.000000e+00> : vector<8x384xf32>
    %155 = tpu.matmul %154, %152, %cst_138 {dimension_numbers = #tpu.dot_dimension_numbers<[1], [0], [0], [1], [0, 0, 1, 1], [], []>} : vector<8x8xbf16>, vector<8x384xbf16>, vector<8x384xf32> -> vector<8x384xf32>
    %156 = arith.addf %150, %155 : vector<8x384xf32>
    %c0_139 = arith.constant 0 : index
    %c0_140 = arith.constant 0 : index
    %c146 = arith.constant 146 : index
    %157 = vector.load %arg1[%c0_139, %c0_140, %c146] : memref<1x8x640xbf16, #tpu.memory_space<vmem>>, vector<1x8x384xbf16>
    %158 = vector.shape_cast %157 : vector<1x8x384xbf16> to vector<8x384xbf16>
    %c26 = arith.constant 26 : index
    %c0_141 = arith.constant 0 : index
    %c0_142 = arith.constant 0 : index
    %159 = vector.load %arg2[%c26, %c0_141, %c0_142] : memref<27x8x8xbf16, #tpu.memory_space<vmem>>, vector<1x8x8xbf16>
    %160 = vector.shape_cast %159 : vector<1x8x8xbf16> to vector<8x8xbf16>
    %cst_143 = arith.constant dense<0.000000e+00> : vector<8x384xf32>
    %161 = tpu.matmul %160, %158, %cst_143 {dimension_numbers = #tpu.dot_dimension_numbers<[1], [0], [0], [1], [0, 0, 1, 1], [], []>} : vector<8x8xbf16>, vector<8x384xbf16>, vector<8x384xf32> -> vector<8x384xf32>
    %162 = arith.addf %156, %161 : vector<8x384xf32>
    %c0_144 = arith.constant 0 : index
    %c0_145 = arith.constant 0 : index
    %163 = vector.load %arg3[%c0_144, %c0_145] : memref<8x1xf32, #tpu.memory_space<vmem>>, vector<8x1xf32>
    %164 = vector.broadcast %163 : vector<8x1xf32> to vector<8x384xf32>
    %165 = arith.addf %162, %164 : vector<8x384xf32>
    %c0_146 = arith.constant 0 : index
    %c0_147 = arith.constant 0 : index
    %c0_148 = arith.constant 0 : index
    %166 = vector.load %arg4[%c0_146, %c0_147, %c0_148] : memref<1x8x1xf32, #tpu.memory_space<vmem>>, vector<1x8x1xf32>
    %167 = vector.shape_cast %166 : vector<1x8x1xf32> to vector<8x1xf32>
    %168 = vector.broadcast %167 : vector<8x1xf32> to vector<8x384xf32>
    %169 = arith.mulf %165, %168 : vector<8x384xf32>
    %c0_149 = arith.constant 0 : index
    %c0_150 = arith.constant 0 : index
    %c0_151 = arith.constant 0 : index
    %170 = vector.load %arg5[%c0_149, %c0_150, %c0_151] : memref<1x8x384xf32, #tpu.memory_space<vmem>>, vector<1x8x384xf32>
    %171 = vector.shape_cast %170 : vector<1x8x384xf32> to vector<8x384xf32>
    %172 = vector.shape_cast %169 : vector<8x384xf32> to vector<1x8x384xf32>
    tpu.vector_store %arg5[%c0_149, %c0_150, %c0_151], %172 {strides = array<i32>} : memref<1x8x384xf32, #tpu.memory_space<vmem>>, vector<1x8x384xf32>,
    return
  }
  func.func @transform_0(%arg0: i32) -> (i32, i32, i32) {
    %c0_i32 = arith.constant 0 : i32
    %c0_i32_0 = arith.constant 0 : i32
    %c0_i32_1 = arith.constant 0 : i32
    return %arg0, %c0_i32, %c0_i32_0 : i32, i32, i32
  }
  func.func @transform_1(%arg0: i32) -> (i32, i32, i32) {
    %c0_i32 = arith.constant 0 : i32
    %c0_i32_0 = arith.constant 0 : i32
    %c0_i32_1 = arith.constant 0 : i32
    %c0_i32_2 = arith.constant 0 : i32
    return %c0_i32, %c0_i32_0, %c0_i32_1 : i32, i32, i32
  }
  func.func @transform_2(%arg0: i32) -> (i32, i32) {
    %c0_i32 = arith.constant 0 : i32
    %c0_i32_0 = arith.constant 0 : i32
    %c0_i32_1 = arith.constant 0 : i32
    return %c0_i32, %c0_i32_0 : i32, i32
  }
  func.func @transform_3(%arg0: i32) -> (i32, i32, i32) {
    %c0_i32 = arith.constant 0 : i32
    %c0_i32_0 = arith.constant 0 : i32
    %c0_i32_1 = arith.constant 0 : i32
    return %arg0, %c0_i32, %c0_i32_0 : i32, i32, i32
  }
  func.func @transform_4(%arg0: i32) -> (i32, i32, i32) {
    %c0_i32 = arith.constant 0 : i32
    %c0_i32_0 = arith.constant 0 : i32
    %c0_i32_1 = arith.constant 0 : i32
    return %arg0, %c0_i32, %c0_i32_0 : i32, i32, i32
  }
}

</mosaic_0001>

<bundles_post_ra>
// kernel: tpu_custom_call.1
= control target key start
LH: loop header
LB: loop body
LE: loop exit
PB: predicated region body
PF: predicated region fallthrough
CT: control target
= control target key end

     0   :  { %9 = vsyncpa [#allocation3], 0  ;;  %s4500_s0 = inlined_call_operand.vmem [shape: bf16[2,8,640], index: 0, kind: input, shape index: {}]   ;;  %s4501_s1 = inlined_call_operand.vmem [shape: bf16[27,8,8], index: 1, kind: input, shape index: {}]   ;;  %s4502_s2 = inlined_call_operand.vmem [shape: f32[8,1], index: 2, kind: input, shape index: {}]   ;;  %s4503_s3 = inlined_call_operand.vmem [shape: f32[2,8,1], index: 3, kind: input, shape index: {}]   ;;  %s4504_s4 = inlined_call_operand.hbm [shape: f32[2,8,384], index: 4, kind: output, shape index: {}]  }
   0x1   :  { %11 = vsyncpa [#allocation3 + $0x1], 0  ;;  %s3820_s15 = smov 0   ;;  %s3822_s16 = smov 0  }
   0x2   :  { %s3824_s17 = smov 0   ;;  %s3826_s18 = smov 0  }
   0x3 LB: > { %s3841_s19 = sadd.s32 4294967295, %s3772_s18   ;;  %s3292_s20 = sadd.s32 4294967294, %s3772_s18   ;;  %s3772_s18 = sphi %s3826_s18, %s4510_s18   ;;  %s3768_s17 = sphi %s3824_s17, %s4509_s17   ;;  %s3764_s16 = sphi %s3822_s16, %s4508_s16   ;;  %s3760_s15 = sphi %s3820_s15, %s4507_s15  }
   0x4   : > { %s3845_s21 = sadd.s32 1, %s3772_s18   ;;  %s118_s22 = sadd.s32 1, %s3768_s17 }
   0x5   : > { %s115_s23 = ssub.s32 %s3772_s18, %s3845_s21  ;;  %p128_p0 = scmp.ne.s32.totalorder %s3768_s17, %s3764_s16 }
   0x6   : > { %p116_p1 = scmp.eq.s32.totalorder %s115_s23, 0  ;;  %p129_p2 = scmp.eq.s32.totalorder %s3841_s19, 1 }
   0x7   : > { %p134_p3 = scmp.ne.s32.totalorder %s3764_s16, %s3760_s15  ;;  %p135_p4 = scmp.eq.s32.totalorder %s3292_s20, 1 }
   0x8   : > { %s3856_s24 = scalar_select %p116_p1, %s3768_s17, %s118_s22  }
   0x9   : > { %p3858_p5 = por %p129_p2, %p128_p0  ;;  %p3862_p6 = por %p135_p4, %p134_p3 }
   0xa   : > { %p3295_p7 = scmp.ge.s32.totalorder %s3772_s18, 1  ;;  %p174_p8 = scmp.lt.s32.totalorder %s3772_s18, 3 }
   0xc   : > { %p175_p9 = pnand %p3295_p7, %p174_p8 }
   0xd   : > { %p204_p10 = scmp.lt.s32.totalorder (!%p175_p9), %s3841_s19, 1  ;;  %v3774_v0 = vmov (!%p175_p9), 0.0   ;;  %v3775_v1 = vmov (!%p175_p9), 0   ;;  %vm3776_vm0 = vmmov (!%p175_p9), 0   ;;  %s3777_s6 = smov (!%p175_p9), 127   ;;  %vm238_vm1 = vcmask (!%p175_p9), 1039360  }
   0xe   : > { %178 = sbr.rel (%p175_p9) target bundleno = 594 (0x252), region = 36  ;;  %3474 = vmatprep.subr.bf16.mxu1 (!%p175_p9), %v3774_v0  ;;  %288 = vmatprep.mubr.bf16.mxu0 (!%p175_p9), %v3775_v1  ;;  %s3778_s7 = smov (!%p175_p9), 126   ;;  %vm246_vm2 = vcmask (!%p175_p9), 1043456   ;;  %v3298_v18 = vld [vmem:[%s4501_s1 + $0x4] sm:$0xf] (!%p175_p9)  ;;  %vm242_vm3 = vcmask (!%p175_p9), 64512  }
   0xf   : > { %3476 = vmatprep.mubr.msk.bf16.mxu1 (!%p175_p9), %vm3776_vm0, %v3774_v0  ;;  %3698 = vset.pattern.permute.xlu0 (!%p175_p9), %v3775_v1  ;;  %s3779_s8 = smov (!%p175_p9), 120   ;;  %s3780_s9 = smov (!%p175_p9), 119   ;;  %vm443_vm4 = vcmask (!%p175_p9), 1031168   ;;  %v216_v28 = vld [vmem:[%s4501_s1] sm:$0xf] (!%p175_p9)  ;;  %vm553_vm5 = vcmask (!%p175_p9), 982016  }
  0x10   : > { %3699 = vset.pattern.permute.xlu1 (!%p175_p9), %v3775_v1  ;;  %s3781_s10 = smov (!%p175_p9), 118   ;;  %s3782_s11 = smov (!%p175_p9), 112   ;;  %v3310_v42 = vld [vmem:[%s4501_s1 + $0x8] sm:$0xf] (!%p175_p9)  ;;  %vm663_vm6 = vcmask (!%p175_p9), 973824   ;;  %vm773_vm7 = vcmask (!%p175_p9), 965632  }
  0x11   : > { %s3783_s12 = smov (!%p175_p9), 111   ;;  %s3784_s13 = smov (!%p175_p9), 110   ;;  %v3314_v54 = vld [vmem:[%s4501_s1 + $0xc] sm:$0xf] (!%p175_p9)  ;;  %vm883_vm8 = vcmask (!%p175_p9), 916480   ;;  %vm993_vm9 = vcmask (!%p175_p9), 908288  }
  0x12   : > { %s3785_s14 = smov (!%p175_p9), 64   ;;  %s3786_s20 = smov (!%p175_p9), 63   ;;  %vm1103_vm10 = vcmask (!%p175_p9), 900096   ;;  %vm1213_vm11 = vcmask (!%p175_p9), 523264   ;;  %vm1323_vm12 = vcmask (!%p175_p9), 515072   ;;  %vm1433_vm13 = vcmask (!%p175_p9), 506880  }
  0x13   : > { %s3787_s22 = smov (!%p175_p9), 62   ;;  %s3788_s23 = smov (!%p175_p9), 56   ;;  %vm1543_vm14 = vcmask (!%p175_p9), 457728   ;;  %vm1653_vm15 = vcmask (!%p175_p9), 449536  }
  0x14   : > { %s3790_s29 = smov (!%p175_p9), 54   ;;  %s3791_s30 = smov (!%p175_p9), 48  }
  0x15   : > { %s3871_s27 = scalar_select %p204_p10, %s3841_s19, 1 }
  0x17   : > { %s3637_s28 = smul.u32 20, %s3871_s27 }
  0x19   : > { %s3882_s5 = scalar_lea.vmem %s4500_s0, %s3637_s28  ;;  %s3789_s28 = smov 55  }
  0x1a   : > { %v217_v2 = vld [vmem:[%s3882_s5 + $0x8] sm:$0xff]  ;;  %v214_v3 = vld [vmem:[%s3882_s5] sm:$0xff] }
  0x1b   : > { %v3886_v4 = vcombine.low %v217_v2, %v217_v2  ;;  %v3888_v5 = vcombine.low %v214_v3, %v214_v3  ;;  %v3894_v6 = vcombine.high %v217_v2, %v217_v2  ;;  %v3896_v7 = vcombine.high %v214_v3, %v214_v3  ;;  %v3704_v15 = vld [vmem:[%s3882_s5 + $0x8] ss:$0 sps:$4 sm:$0xff]   ;;  %v2302_v41 = vld [vmem:[%s3882_s5 + $0xc] sm:$0xff] }
  0x1c   : > { %v350_v22 = vsel %vm246_vm2, %v3704_v15, 0  ;;  %v2301_v32 = vld [vmem:[%s3882_s5 + $0x4] sm:$0xff]  ;;  %v4050_v47 = vcombine.low %v2302_v41, %v2302_v41  ;;  %v4054_v48 = vcombine.high %v2302_v41, %v2302_v41  ;;  %v3318_v2 = vld [vmem:[%s4501_s1 + $0x10] sm:$0xf] }
  0x1d   : > { %234 = vrot.lane.b32.xlu1 %v3886_v4, %s3777_s6  ;;  %230 = vrot.lane.b32.xlu0 %v3888_v5, %s3777_s6  ;;  %v344_v20 = vsel %vm246_vm2, %v3888_v5, 0  ;;  %v4027_v34 = vcombine.low %v2301_v32, %v2301_v32  ;;  %v4030_v37 = vcombine.high %v2301_v32, %v2301_v32  ;;  %v3330_v32 = vld [vmem:[%s4501_s1 + $0x1c] sm:$0xf] }
  0x21   : > { %236 = vrot.lane.b32.xlu1 %v3894_v6, %s3777_s6  ;;  %232 = vrot.lane.b32.xlu0 %v3896_v7, %s3777_s6 }
  0x25   : > { %435 = vrot.lane.b32.xlu0 %v3888_v5, %s3778_s7  ;;  %437 = vrot.lane.b32.xlu1 %v3896_v7, %s3778_s7 }
  0x29   : > { %439 = vrot.lane.b32.xlu0 %v3886_v4, %s3778_s7  ;;  %441 = vrot.lane.b32.xlu1 %v3894_v6, %s3778_s7 }
  0x2d   : > { %545 = vrot.lane.b32.xlu0 %v3888_v5, %s3779_s8  ;;  %547 = vrot.lane.b32.xlu1 %v3896_v7, %s3779_s8 }
  0x31   : > { %549 = vrot.lane.b32.xlu0 %v3886_v4, %s3779_s8  ;;  %551 = vrot.lane.b32.xlu1 %v3894_v6, %s3779_s8 }
  0x35   : > { %655 = vrot.lane.b32.xlu0 %v3888_v5, %s3780_s9  ;;  %657 = vrot.lane.b32.xlu1 %v3896_v7, %s3780_s9 }
  0x39   : > { %659 = vrot.lane.b32.xlu0 %v3886_v4, %s3780_s9  ;;  %661 = vrot.lane.b32.xlu1 %v3894_v6, %s3780_s9 }
  0x3d   : > { %765 = vrot.lane.b32.xlu0 %v3888_v5, %s3781_s10  ;;  %767 = vrot.lane.b32.xlu1 %v3896_v7, %s3781_s10 }
  0x41   : > { %769 = vrot.lane.b32.xlu0 %v3886_v4, %s3781_s10  ;;  %771 = vrot.lane.b32.xlu1 %v3894_v6, %s3781_s10 }
  0x45   : > { %875 = vrot.lane.b32.xlu0 %v3888_v5, %s3782_s11  ;;  %877 = vrot.lane.b32.xlu1 %v3896_v7, %s3782_s11 }
  0x49   : > { %879 = vrot.lane.b32.xlu0 %v3886_v4, %s3782_s11  ;;  %881 = vrot.lane.b32.xlu1 %v3894_v6, %s3782_s11 }
  0x4d   : > { %985 = vrot.lane.b32.xlu0 %v3888_v5, %s3783_s12  ;;  %987 = vrot.lane.b32.xlu1 %v3896_v7, %s3783_s12 }
  0x51   : > { %989 = vrot.lane.b32.xlu0 %v3886_v4, %s3783_s12  ;;  %991 = vrot.lane.b32.xlu1 %v3894_v6, %s3783_s12 }
  0x55   : > { %1095 = vrot.lane.b32.xlu0 %v3888_v5, %s3784_s13  ;;  %1097 = vrot.lane.b32.xlu1 %v3896_v7, %s3784_s13 }
  0x59   : > { %1099 = vrot.lane.b32.xlu0 %v3886_v4, %s3784_s13  ;;  %1101 = vrot.lane.b32.xlu1 %v3894_v6, %s3784_s13 }
  0x5d   : > { %1205 = vrot.lane.b32.xlu0 %v3888_v5, %s3785_s14  ;;  %1207 = vrot.lane.b32.xlu1 %v3896_v7, %s3785_s14 }
  0x61   : > { %1209 = vrot.lane.b32.xlu0 %v3886_v4, %s3785_s14  ;;  %1211 = vrot.lane.b32.xlu1 %v3894_v6, %s3785_s14  ;;  %s3792_s14 = smov 47  }
  0x65   : > { %1315 = vrot.lane.b32.xlu0 %v3888_v5, %s3786_s20  ;;  %1317 = vrot.lane.b32.xlu1 %v3896_v7, %s3786_s20 }
  0x69   : > { %1319 = vrot.lane.b32.xlu0 %v3886_v4, %s3786_s20  ;;  %1321 = vrot.lane.b32.xlu1 %v3894_v6, %s3786_s20 }
  0x6d   : > { %1425 = vrot.lane.b32.xlu0 %v3888_v5, %s3787_s22  ;;  %1427 = vrot.lane.b32.xlu1 %v3896_v7, %s3787_s22 }
  0x71   : > { %1429 = vrot.lane.b32.xlu0 %v3886_v4, %s3787_s22  ;;  %1431 = vrot.lane.b32.xlu1 %v3894_v6, %s3787_s22 }
  0x75   : > { %1535 = vrot.lane.b32.xlu0 %v3888_v5, %s3788_s23  ;;  %1537 = vrot.lane.b32.xlu1 %v3896_v7, %s3788_s23 }
  0x79   : > { %1539 = vrot.lane.b32.xlu0 %v3886_v4, %s3788_s23  ;;  %1541 = vrot.lane.b32.xlu1 %v3894_v6, %s3788_s23  ;;  %s3793_s23 = smov 46  }
  0x7d   : > { %1645 = vrot.lane.b32.xlu0 %v3888_v5, %s3789_s28  ;;  %1647 = vrot.lane.b32.xlu1 %v3896_v7, %s3789_s28 }
  0x81   : > { %1649 = vrot.lane.b32.xlu0 %v3886_v4, %s3789_s28  ;;  %1651 = vrot.lane.b32.xlu1 %v3894_v6, %s3789_s28 }
  0x85   : > { %1755 = vrot.lane.b32.xlu0 %v3888_v5, %s3790_s29  ;;  %1757 = vrot.lane.b32.xlu1 %v3896_v7, %s3790_s29 }
  0x89   : > { %1759 = vrot.lane.b32.xlu0 %v3886_v4, %s3790_s29  ;;  %1761 = vrot.lane.b32.xlu1 %v3894_v6, %s3790_s29 }
  0x8d   : > { %1865 = vrot.lane.b32.xlu0 %v3888_v5, %s3791_s30  ;;  %1867 = vrot.lane.b32.xlu1 %v3896_v7, %s3791_s30 }
  0x8f   : > { %v235_v8 = vpop.permute.xlu1 %234  ;;  %v231_v9 = vpop.permute.xlu0 %230 }
  0x91   : > { %1869 = vrot.lane.b32.xlu0 %v3886_v4, %s3791_s30  ;;  %1871 = vrot.lane.b32.xlu1 %v3894_v6, %s3791_s30  ;;  %s3297_s30 = sshll.u32 %s3871_s27, 3 }
  0x93   : > { %v237_v10 = vpop.permute.xlu1 %236  ;;  %v233_v11 = vpop.permute.xlu0 %232 }
  0x94   : > { %v240_v12 = vsel %vm238_vm1, %v233_v11, %v235_v8  ;;  %v241_v13 = vsel %vm238_vm1, %v235_v8, %v237_v10  ;;  %v239_v14 = vsel %vm238_vm1, %v231_v9, %v233_v11 }
  0x95   : > { %3303 = vmatprep.subr.msk.bf16.mxu0 %vm246_vm2, %v240_v12  ;;  %v254_v16 = vsel %vm246_vm2, %v241_v13, 0  ;;  %1975 = vrot.lane.b32.xlu0 %v3888_v5, %s3792_s14  ;;  %v248_v17 = vsel %vm246_vm2, %v239_v14, 0  ;;  %v3322_v12 = vld [vmem:[%s4501_s1 + $0x14] sm:$0xf] }
  0x96   : > { %3475 = vmatpush3.bf16.msra.mxu1 %v254_v16  ;;  %257 = vmatpush1.bf16.msra.mxu0 %v248_v17 }
  0x97   : > { %v436_v19 = vpop.permute.xlu0 %435  ;;  %1977 = vrot.lane.b32.xlu1 %v3896_v7, %s3792_s14  ;;  %3307 = vmatprep.subr.msk.bf16.mxu0 %vm246_vm2, %v3896_v7  ;;  %v438_v21 = vpop.permute.xlu1 %437 }
  0x98   : > { %3480 = vmatprep.subr.bf16.mxu1 %v3774_v0  ;;  %v444_v25 = vsel %vm443_vm4, %v436_v19, %v438_v21 }
  0x99   : > { %3477 = vmatmul.mubr.msk.bf16.vlgmr.msra.gmra.mrb[0].mxu1 %vm242_vm3, %v3298_v18  ;;  %3304 = vmatmul.mubr.msk.bf16.vlgmr.msra.gmra.mrb[0].mxu0 %vm242_vm3, %v3298_v18  ;;  %v451_v29 = vsel %vm246_vm2, %v444_v25, 0 }
  0x9a   : > { %1979 = vrot.lane.b32.xlu0 %v3886_v4, %s3792_s14  ;;  %353 = vmatpush1.bf16.msra.mxu0 %v344_v20 }
  0x9b   : > { %3481 = vmatpush3.bf16.msra.mxu1 %v350_v22  ;;  %v440_v23 = vpop.permute.xlu0 %439  ;;  %1981 = vrot.lane.b32.xlu1 %v3894_v6, %s3792_s14  ;;  %v442_v24 = vpop.permute.xlu1 %441  ;;  %v3326_v22 = vld [vmem:[%s4501_s1 + $0x18] sm:$0xf] }
  0x9c   : > { %v445_v26 = vsel %vm443_vm4, %v438_v21, %v440_v23  ;;  %384 = vmatprep.mubr.bf16.mxu0 %v3775_v1  ;;  %3482 = vmatprep.mubr.msk.bf16.mxu1 %vm3776_vm0, %v3774_v0  ;;  %v446_v27 = vsel %vm443_vm4, %v440_v23, %v442_v24 }
  0x9d   : > { %3311 = vmatprep.subr.msk.bf16.mxu0 %vm246_vm2, %v445_v26  ;;  %3486 = vmatprep.subr.bf16.mxu1 %v3774_v0  ;;  %v457_v33 = vsel %vm246_vm2, %v446_v27, 0 }
  0x9e   : > { %2085 = vrot.lane.b32.xlu0 %v3888_v5, %s3793_s23 }
  0x9f   : > { %v546_v30 = vpop.permute.xlu0 %545  ;;  %2087 = vrot.lane.b32.xlu1 %v3896_v7, %s3793_s23  ;;  %v548_v31 = vpop.permute.xlu1 %547 }
  0xa0   : > { %v554_v38 = vsel %vm553_vm5, %v546_v30, %v548_v31 }
  0xa1   : > { %3483 = vmatmul.mubr.msk.bf16.vlgmr.msra.gmra.mrb[4].mxu1 %vm242_vm3, %v216_v28  ;;  %3308 = vmatmul.mubr.msk.bf16.vlgmr.msra.gmra.mrb[4].mxu0 %vm242_vm3, %v216_v28  ;;  %v561_v43 = vsel %vm246_vm2, %v554_v38, 0 }
  0xa2   : > { %460 = vmatpush1.bf16.msra.mxu0 %v451_v29  ;;  %2089 = vrot.lane.b32.xlu0 %v3886_v4, %s3793_s23 }
  0xa3   : > { %3487 = vmatpush3.bf16.msra.mxu1 %v457_v33  ;;  %v550_v35 = vpop.permute.xlu0 %549  ;;  %2091 = vrot.lane.b32.xlu1 %v3894_v6, %s3793_s23  ;;  %v552_v36 = vpop.permute.xlu1 %551 }
  0xa4   : > { %v555_v39 = vsel %vm553_vm5, %v548_v31, %v550_v35  ;;  %v556_v40 = vsel %vm553_vm5, %v550_v35, %v552_v36  ;;  %3488 = vmatprep.mubr.msk.bf16.mxu1 %vm3776_vm0, %v3774_v0  ;;  %491 = vmatprep.mubr.bf16.mxu0 %v3775_v1 }
  0xa5   : > { %3315 = vmatprep.subr.msk.bf16.mxu0 %vm246_vm2, %v555_v39  ;;  %3492 = vmatprep.subr.bf16.mxu1 %v3774_v0  ;;  %v567_v44 = vsel %vm246_vm2, %v556_v40, 0 }
  0xa6   : > { %2315 = vrot.lane.b32.xlu0 %v4027_v34, %s3777_s6 }
  0xa7   : > { %v656_v45 = vpop.permute.xlu0 %655  ;;  %v658_v46 = vpop.permute.xlu1 %657  ;;  %2317 = vrot.lane.b32.xlu1 %v4030_v37, %s3777_s6 }
  0xa8   : > { %v664_v51 = vsel %vm663_vm6, %v656_v45, %v658_v46 }
  0xa9   : > { %3312 = vmatmul.mubr.msk.bf16.vlgmr.msra.gmra.mrb[8].mxu0 %vm242_vm3, %v3310_v42  ;;  %3489 = vmatmul.mubr.msk.bf16.vlgmr.msra.gmra.mrb[8].mxu1 %vm242_vm3, %v3310_v42  ;;  %v671_v55 = vsel %vm246_vm2, %v664_v51, 0 }
  0xaa   : > { %570 = vmatpush1.bf16.msra.mxu0 %v561_v43  ;;  %3493 = vmatpush3.bf16.msra.mxu1 %v567_v44  ;;  %v3334_v44 = vld [vmem:[%s4501_s1 + $0x20] sm:$0xf] }
  0xab   : > { %v660_v49 = vpop.permute.xlu0 %659  ;;  %v662_v50 = vpop.permute.xlu1 %661  ;;  %3494 = vmatprep.mubr.msk.bf16.mxu1 %vm3776_vm0, %v3774_v0  ;;  %601 = vmatprep.mubr.bf16.mxu0 %v3775_v1 }
  0xac   : > { %v665_v52 = vsel %vm663_vm6, %v658_v46, %v660_v49  ;;  %v666_v53 = vsel %vm663_vm6, %v660_v49, %v662_v50  ;;  %3498 = vmatprep.subr.bf16.mxu1 %v3774_v0  ;;  %2319 = vrot.lane.b32.xlu0 %v4050_v47, %s3777_s6 }
  0xad   : > { %3319 = vmatprep.subr.msk.bf16.mxu0 %vm246_vm2, %v665_v52  ;;  %2321 = vrot.lane.b32.xlu1 %v4054_v48, %s3777_s6  ;;  %v677_v56 = vsel %vm246_vm2, %v666_v53, 0 }
  0xaf   : > { %v766_v57 = vpop.permute.xlu0 %765  ;;  %v768_v58 = vpop.permute.xlu1 %767 }
  0xb0   : > { %2424 = vrot.lane.b32.xlu0 %v4027_v34, %s3778_s7  ;;  %v774_v61 = vsel %vm773_vm7, %v766_v57, %v768_v58 }
  0xb1   : > { %3316 = vmatmul.mubr.msk.bf16.vlgmr.msra.gmra.mrb[12].mxu0 %vm242_vm3, %v3314_v54  ;;  %3495 = vmatmul.mubr.msk.bf16.vlgmr.msra.gmra.mrb[12].mxu1 %vm242_vm3, %v3314_v54  ;;  %v781_v3 = vsel %vm246_vm2, %v774_v61, 0 }
  0xb2   : > { %680 = vmatpush1.bf16.msra.mxu0 %v671_v55  ;;  %3499 = vmatpush3.bf16.msra.mxu1 %v677_v56  ;;  %v3338_v56 = vld [vmem:[%s4501_s1 + $0x24] sm:$0xf] }
  0xb3   : > { %v770_v59 = vpop.permute.xlu0 %769  ;;  %v772_v60 = vpop.permute.xlu1 %771  ;;  %3500 = vmatprep.mubr.msk.bf16.mxu1 %vm3776_vm0, %v3774_v0  ;;  %711 = vmatprep.mubr.bf16.mxu0 %v3775_v1 }
  0xb4   : > { %v775_v62 = vsel %vm773_vm7, %v768_v58, %v770_v59  ;;  %v776_v63 = vsel %vm773_vm7, %v770_v59, %v772_v60  ;;  %2426 = vrot.lane.b32.xlu1 %v4030_v37, %s3778_s7  ;;  %3504 = vmatprep.subr.bf16.mxu1 %v3774_v0 }
  0xb5   : > { %3323 = vmatprep.subr.msk.bf16.mxu0 %vm246_vm2, %v775_v62  ;;  %2428 = vrot.lane.b32.xlu0 %v4050_v47, %s3778_s7  ;;  %v787_v4 = vsel %vm246_vm2, %v776_v63, 0 }
  0xb7   : > { %v876_v5 = vpop.permute.xlu0 %875  ;;  %v878_v6 = vpop.permute.xlu1 %877 }
  0xb8   : > { %2430 = vrot.lane.b32.xlu1 %v4054_v48, %s3778_s7  ;;  %v884_v9 = vsel %vm883_vm8, %v876_v5, %v878_v6 }
  0xb9   : > { %3320 = vmatmul.mubr.msk.bf16.vlgmr.msra.gmra.mrb[16].mxu0 %vm242_vm3, %v3318_v2  ;;  %3501 = vmatmul.mubr.msk.bf16.vlgmr.msra.gmra.mrb[16].mxu1 %vm242_vm3, %v3318_v2  ;;  %v891_v13 = vsel %vm246_vm2, %v884_v9, 0 }
  0xba   : > { %790 = vmatpush1.bf16.msra.mxu0 %v781_v3  ;;  %3505 = vmatpush3.bf16.msra.mxu1 %v787_v4  ;;  %v3342_v4 = vld [vmem:[%s4501_s1 + $0x28] sm:$0xf] }
  0xbb   : > { %v880_v7 = vpop.permute.xlu0 %879  ;;  %2533 = vrot.lane.b32.xlu0 %v4027_v34, %s3779_s8  ;;  %v882_v8 = vpop.permute.xlu1 %881  ;;  %3506 = vmatprep.mubr.msk.bf16.mxu1 %vm3776_vm0, %v3774_v0 }
  0xbc   : > { %v885_v10 = vsel %vm883_vm8, %v878_v6, %v880_v7  ;;  %v886_v11 = vsel %vm883_vm8, %v880_v7, %v882_v8  ;;  %821 = vmatprep.mubr.bf16.mxu0 %v3775_v1  ;;  %2535 = vrot.lane.b32.xlu1 %v4030_v37, %s3779_s8 }
  0xbd   : > { %3327 = vmatprep.subr.msk.bf16.mxu0 %vm246_vm2, %v885_v10  ;;  %3510 = vmatprep.subr.bf16.mxu1 %v3774_v0  ;;  %v897_v14 = vsel %vm246_vm2, %v886_v11, 0 }
  0xbf   : > { %v986_v15 = vpop.permute.xlu0 %985  ;;  %2537 = vrot.lane.b32.xlu0 %v4050_v47, %s3779_s8  ;;  %v988_v16 = vpop.permute.xlu1 %987 }
  0xc0   : > { %2539 = vrot.lane.b32.xlu1 %v4054_v48, %s3779_s8  ;;  %v994_v19 = vsel %vm993_vm9, %v986_v15, %v988_v16  ;;  %s201_s8 = sand.u32 1, %s3764_s16  }
  0xc1   : > { %3324 = vmatmul.mubr.msk.bf16.vlgmr.msra.gmra.mrb[20].mxu0 %vm242_vm3, %v3322_v12  ;;  %3507 = vmatmul.mubr.msk.bf16.vlgmr.msra.gmra.mrb[20].mxu1 %vm242_vm3, %v3322_v12  ;;  %v1001_v23 = vsel %vm246_vm2, %v994_v19, 0  ;;  %s3636_s29 = smul.u32 24, %s201_s8 }
  0xc2   : > { %900 = vmatpush1.bf16.msra.mxu0 %v891_v13  ;;  %3511 = vmatpush3.bf16.msra.mxu1 %v897_v14 }
  0xc3   : > { %v990_v17 = vpop.permute.xlu0 %989  ;;  %2642 = vrot.lane.b32.xlu0 %v4027_v34, %s3780_s9  ;;  %v992_v18 = vpop.permute.xlu1 %991  ;;  %3512 = vmatprep.mubr.msk.bf16.mxu1 %vm3776_vm0, %v3774_v0 }
  0xc4   : > { %v995_v20 = vsel %vm993_vm9, %v988_v16, %v990_v17  ;;  %v996_v21 = vsel %vm993_vm9, %v990_v17, %v992_v18  ;;  %931 = vmatprep.mubr.bf16.mxu0 %v3775_v1  ;;  %2644 = vrot.lane.b32.xlu1 %v4030_v37, %s3780_s9 }
  0xc5   : > { %3331 = vmatprep.subr.msk.bf16.mxu0 %vm246_vm2, %v995_v20  ;;  %3516 = vmatprep.subr.bf16.mxu1 %v3774_v0  ;;  %v1007_v24 = vsel %vm246_vm2, %v996_v21, 0 }
  0xc7   : > { %v1096_v25 = vpop.permute.xlu0 %1095  ;;  %2646 = vrot.lane.b32.xlu0 %v4050_v47, %s3780_s9  ;;  %v1098_v26 = vpop.permute.xlu1 %1097 }
  0xc8   : > { %2648 = vrot.lane.b32.xlu1 %v4054_v48, %s3780_s9  ;;  %v1104_v29 = vsel %vm1103_vm10, %v1096_v25, %v1098_v26  ;;  %s3638_s9 = smul.u32 384, %s3841_s19  ;;  %s3207_s19 = scalar_lea.sflag [#allocation3], %s201_s8 }
  0xc9   : > { %3328 = vmatmul.mubr.msk.bf16.vlgmr.msra.gmra.mrb[24].mxu0 %vm242_vm3, %v3326_v22  ;;  %3513 = vmatmul.mubr.msk.bf16.vlgmr.msra.gmra.mrb[24].mxu1 %vm242_vm3, %v3326_v22  ;;  %v1111_v33 = vsel %vm246_vm2, %v1104_v29, 0  ;;  %v3350_v22 = vld [vmem:[%s4501_s1 + $0x30] sm:$0xf] }
  0xca   : > { %1010 = vmatpush1.bf16.msra.mxu0 %v1001_v23  ;;  %3517 = vmatpush3.bf16.msra.mxu1 %v1007_v24  ;;  %s4456_s27 = scalar_lea.hbm %s4504_s4, %s3638_s9 }
  0xcb   : > { %v1100_v27 = vpop.permute.xlu0 %1099  ;;  %2751 = vrot.lane.b32.xlu0 %v4027_v34, %s3781_s10  ;;  %v1102_v28 = vpop.permute.xlu1 %1101  ;;  %3518 = vmatprep.mubr.msk.bf16.mxu1 %vm3776_vm0, %v3774_v0 }
  0xcc   : > { %v1105_v30 = vsel %vm1103_vm10, %v1098_v26, %v1100_v27  ;;  %v1106_v31 = vsel %vm1103_vm10, %v1100_v27, %v1102_v28  ;;  %1041 = vmatprep.mubr.bf16.mxu0 %v3775_v1  ;;  %2753 = vrot.lane.b32.xlu1 %v4030_v37, %s3781_s10 }
  0xcd   : > { %3335 = vmatprep.subr.msk.bf16.mxu0 %vm246_vm2, %v1105_v30  ;;  %3522 = vmatprep.subr.bf16.mxu1 %v3774_v0  ;;  %v1117_v35 = vsel %vm246_vm2, %v1106_v31, 0 }
  0xcf   : > { %v1206_v36 = vpop.permute.xlu0 %1205  ;;  %2755 = vrot.lane.b32.xlu0 %v4050_v47, %s3781_s10  ;;  %v1208_v38 = vpop.permute.xlu1 %1207 }
  0xd0   : > { %2757 = vrot.lane.b32.xlu1 %v4054_v48, %s3781_s10  ;;  %v1214_v41 = vsel %vm1213_vm11, %v1206_v36, %v1208_v38 }
  0xd1   : > { %3332 = vmatmul.mubr.msk.bf16.vlgmr.msra.gmra.mrb[28].mxu0 %vm242_vm3, %v3330_v32  ;;  %3519 = vmatmul.mubr.msk.bf16.vlgmr.msra.gmra.mrb[28].mxu1 %vm242_vm3, %v3330_v32  ;;  %v1221_v45 = vsel %vm246_vm2, %v1214_v41, 0  ;;  %v3354_v32 = vld [vmem:[%s4501_s1 + $0x34] sm:$0xf] }
  0xd2   : > { %1120 = vmatpush1.bf16.msra.mxu0 %v1111_v33  ;;  %3523 = vmatpush3.bf16.msra.mxu1 %v1117_v35 }
  0xd3   : > { %v1210_v39 = vpop.permute.xlu0 %1209  ;;  %2860 = vrot.lane.b32.xlu0 %v4027_v34, %s3782_s11  ;;  %v1212_v40 = vpop.permute.xlu1 %1211  ;;  %3524 = vmatprep.mubr.msk.bf16.mxu1 %vm3776_vm0, %v3774_v0 }
  0xd4   : > { %v1215_v42 = vsel %vm1213_vm11, %v1208_v38, %v1210_v39  ;;  %v1216_v43 = vsel %vm1213_vm11, %v1210_v39, %v1212_v40  ;;  %1151 = vmatprep.mubr.bf16.mxu0 %v3775_v1  ;;  %2862 = vrot.lane.b32.xlu1 %v4030_v37, %s3782_s11  ;;  %vm1763_vm11 = vcmask 441344  }
  0xd5   : > { %3339 = vmatprep.subr.msk.bf16.mxu0 %vm246_vm2, %v1215_v42  ;;  %3528 = vmatprep.subr.bf16.mxu1 %v3774_v0  ;;  %v1227_v46 = vsel %vm246_vm2, %v1216_v43, 0 }
  0xd7   : > { %v1316_v49 = vpop.permute.xlu0 %1315  ;;  %2864 = vrot.lane.b32.xlu0 %v4050_v47, %s3782_s11  ;;  %v1318_v50 = vpop.permute.xlu1 %1317 }
  0xd8   : > { %2866 = vrot.lane.b32.xlu1 %v4054_v48, %s3782_s11  ;;  %v1324_v53 = vsel %vm1323_vm12, %v1316_v49, %v1318_v50  ;;  %s212_s11 = scalar_lea.vmem %s4503_s3, %s3297_s30  ;;  %s203_s30 = scalar_lea.vmem [#allocation2], %s3636_s29 }
  0xd9   : > { %3336 = vmatmul.mubr.msk.bf16.vlgmr.msra.gmra.mrb[32].mxu0 %vm242_vm3, %v3334_v44  ;;  %3525 = vmatmul.mubr.msk.bf16.vlgmr.msra.gmra.mrb[32].mxu1 %vm242_vm3, %v3334_v44  ;;  %v1331_v57 = vsel %vm246_vm2, %v1324_v53, 0  ;;  %v3358_v44 = vld [vmem:[%s4501_s1 + $0x38] sm:$0xf]  ;;  %s3221_s10 = sshll.u32 %s203_s30, 4  ;;  %s4458_s10 = int_to_ptr.vmem [resolvable:$true] %s3221_s10 }
  0xda   : > { %1230 = vmatpush1.bf16.msra.mxu0 %v1221_v45  ;;  %3529 = vmatpush3.bf16.msra.mxu1 %v1227_v46  ;;  %s3710_s20 = scalar_lea.vmem %s4458_s10, 384 }
  0xdb   : > { %v1320_v51 = vpop.permute.xlu0 %1319  ;;  %2969 = vrot.lane.b32.xlu0 %v4027_v34, %s3783_s12  ;;  %v1322_v52 = vpop.permute.xlu1 %1321  ;;  %3530 = vmatprep.mubr.msk.bf16.mxu1 %vm3776_vm0, %v3774_v0  ;;  %p3711_p11 = scmp.ne.s32.totalorder %s4458_s10, %s3710_s20 }
  0xdc   : > { %v1325_v54 = vsel %vm1323_vm12, %v1318_v50, %v1320_v51  ;;  %v1326_v55 = vsel %vm1323_vm12, %v1320_v51, %v1322_v52  ;;  %1261 = vmatprep.mubr.bf16.mxu0 %v3775_v1  ;;  %2971 = vrot.lane.b32.xlu1 %v4030_v37, %s3783_s12  ;;  %vm1873_vm12 = vcmask 392192  }
  0xdd   : > { %3343 = vmatprep.subr.msk.bf16.mxu0 %vm246_vm2, %v1325_v54  ;;  %3534 = vmatprep.subr.bf16.mxu1 %v3774_v0  ;;  %v1337_v58 = vsel %vm246_vm2, %v1326_v55, 0  ;;  %p3712_p12 = pnand %p3711_p11, %p3858_p5 }
  0xdf   : > { %v1426_v59 = vpop.permute.xlu0 %1425  ;;  %2973 = vrot.lane.b32.xlu0 %v4050_v47, %s3783_s12  ;;  %v1428_v60 = vpop.permute.xlu1 %1427  ;;  %p3713_p13 = pneg %p3712_p12 }
  0xe0   : > { %2975 = vrot.lane.b32.xlu1 %v4054_v48, %s3783_s12  ;;  %v1434_v63 = vsel %vm1433_vm13, %v1426_v59, %v1428_v60  ;;  %s3794_s12 = smov [#allocation2]  }
  0xe1   : > { %3340 = vmatmul.mubr.msk.bf16.vlgmr.msra.gmra.mrb[36].mxu0 %vm242_vm3, %v3338_v56  ;;  %3531 = vmatmul.mubr.msk.bf16.vlgmr.msra.gmra.mrb[36].mxu1 %vm242_vm3, %v3338_v56  ;;  %v1441_v5 = vsel %vm246_vm2, %v1434_v63, 0  ;;  %v3362_v56 = vld [vmem:[%s4501_s1 + $0x3c] sm:$0xf] }
  0xe2   : > { %1340 = vmatpush1.bf16.msra.mxu0 %v1331_v57  ;;  %3535 = vmatpush3.bf16.msra.mxu1 %v1337_v58 }
  0xe3   : > { %v1430_v61 = vpop.permute.xlu0 %1429  ;;  %3078 = vrot.lane.b32.xlu0 %v4027_v34, %s3784_s13  ;;  %v1432_v62 = vpop.permute.xlu1 %1431  ;;  %3536 = vmatprep.mubr.msk.bf16.mxu1 %vm3776_vm0, %v3774_v0 }
  0xe4   : > { %v1435_v2 = vsel %vm1433_vm13, %v1428_v60, %v1430_v61  ;;  %v1436_v3 = vsel %vm1433_vm13, %v1430_v61, %v1432_v62  ;;  %1371 = vmatprep.mubr.bf16.mxu0 %v3775_v1  ;;  %3080 = vrot.lane.b32.xlu1 %v4030_v37, %s3784_s13  ;;  %vm1983_vm13 = vcmask 384000  }
  0xe5   : > { %3347 = vmatprep.subr.msk.bf16.mxu0 %vm246_vm2, %v1435_v2  ;;  %3540 = vmatprep.subr.bf16.mxu1 %v3774_v0  ;;  %v1447_v6 = vsel %vm246_vm2, %v1436_v3, 0 }
  0xe7   : > { %v1536_v7 = vpop.permute.xlu0 %1535  ;;  %3082 = vrot.lane.b32.xlu0 %v4050_v47, %s3784_s13  ;;  %v1538_v8 = vpop.permute.xlu1 %1537 }
  0xe8   : > { %3084 = vrot.lane.b32.xlu1 %v4054_v48, %s3784_s13  ;;  %v1544_v11 = vsel %vm1543_vm14, %v1536_v7, %v1538_v8  ;;  %v3346_v48 = vld [vmem:[%s4501_s1 + $0x2c] sm:$0xf] }
  0xe9   : > { %3344 = vmatmul.mubr.msk.bf16.vlgmr.msra.gmra.mrb[40].mxu0 %vm242_vm3, %v3342_v4  ;;  %3537 = vmatmul.mubr.msk.bf16.vlgmr.msra.gmra.mrb[40].mxu1 %vm242_vm3, %v3342_v4  ;;  %v1551_v13 = vsel %vm246_vm2, %v1544_v11, 0  ;;  %v3366_v4 = vld [vmem:[%s4501_s1 + $0x40] sm:$0xf] }
  0xea   : > { %1450 = vmatpush1.bf16.msra.mxu0 %v1441_v5  ;;  %3541 = vmatpush3.bf16.msra.mxu1 %v1447_v6 }
  0xeb   : > { %v1540_v9 = vpop.permute.xlu0 %1539  ;;  %v1542_v10 = vpop.permute.xlu1 %1541  ;;  %3542 = vmatprep.mubr.msk.bf16.mxu1 %vm3776_vm0, %v3774_v0  ;;  %1481 = vmatprep.mubr.bf16.mxu0 %v3775_v1 }
  0xec   : > { %v1545_v47 = vsel %vm1543_vm14, %v1538_v8, %v1540_v9  ;;  %v1546_v12 = vsel %vm1543_vm14, %v1540_v9, %v1542_v10  ;;  %3546 = vmatprep.subr.bf16.mxu1 %v3774_v0  ;;  %vm2093_vm14 = vcmask 375808   ;;  %v3709_v9 = vld [vmem:[%s3882_s5 + $0xc] ss:$0 sps:$4 sm:$0xff]   ;;  %v3370_v10 = vld [vmem:[%s4501_s1 + $0x44] sm:$0xf]  ;;  %s3714_s5 = sshll.u32 %s3794_s12, 4  ;;  %s3715_s5 = int_to_ptr.vmem [resolvable:$false] %s3714_s5 }
  0xed   : > { %3351 = vmatprep.subr.msk.bf16.mxu0 %vm246_vm2, %v1545_v47  ;;  %v1557_v14 = vsel %vm246_vm2, %v1546_v12, 0  ;;  %v2209_v47 = vsel %vm246_vm2, %v4027_v34, 0  ;;  %v2215_v12 = vsel %vm246_vm2, %v3709_v9, 0  ;;  %v3401_v9 = vld [vmem:[%s4501_s1 + $0x5c] sm:$0xf]  ;;  %s3716_s22 = scalar_lea.vmem %s3715_s5, 768  ;;  %p3717_p0 = scmp.lt.s32.totalorder %s4458_s10, %s3715_s5 }
  0xee   : > { %p3718_p1 = scmp.lt.s32.totalorder %s3716_s22, %s3710_s20 }
  0xef   : > { %v1646_v15 = vpop.permute.xlu0 %1645  ;;  %v1648_v16 = vpop.permute.xlu1 %1647 }
  0xf0   : > { %v1654_v19 = vsel %vm1653_vm15, %v1646_v15, %v1648_v16  ;;  %v3374_v15 = vld [vmem:[%s4501_s1 + $0x48] sm:$0xf]  ;;  %p3719_p2 = por %p3718_p1, %p3717_p0 }
  0xf1   : > { %3348 = vmatmul.mubr.msk.bf16.vlgmr.msra.gmra.mrb[44].mxu0 %vm242_vm3, %v3346_v48  ;;  %3543 = vmatmul.mubr.msk.bf16.vlgmr.msra.gmra.mrb[44].mxu1 %vm242_vm3, %v3346_v48  ;;  %v1661_v23 = vsel %vm246_vm2, %v1654_v19, 0 }
  0xf2   : > { %1560 = vmatpush1.bf16.msra.mxu0 %v1551_v13  ;;  %3547 = vmatpush3.bf16.msra.mxu1 %v1557_v14  ;;  %p3720_p3 = pnand %p3719_p2, %p3713_p13 }
  0xf3   : > { %v1650_v17 = vpop.permute.xlu0 %1649  ;;  %v1652_v18 = vpop.permute.xlu1 %1651  ;;  %3548 = vmatprep.mubr.msk.bf16.mxu1 %vm3776_vm0, %v3774_v0  ;;  %1591 = vmatprep.mubr.bf16.mxu0 %v3775_v1 }
  0xf4   : > { %v1655_v20 = vsel %vm1653_vm15, %v1648_v16, %v1650_v17  ;;  %v1656_v21 = vsel %vm1653_vm15, %v1650_v17, %v1652_v18  ;;  %3552 = vmatprep.subr.bf16.mxu1 %v3774_v0 }
  0xf5   : > { %3355 = vmatprep.subr.msk.bf16.mxu0 %vm246_vm2, %v1655_v20  ;;  %v1667_v24 = vsel %vm246_vm2, %v1656_v21, 0 }
  0xf7   : > { %v1756_v25 = vpop.permute.xlu0 %1755  ;;  %v1758_v26 = vpop.permute.xlu1 %1757 }
  0xf8   : > { %v1764_v29 = vsel %vm1763_vm11, %v1756_v25, %v1758_v26  ;;  %v3381_v25 = vld [vmem:[%s4501_s1 + $0x4c] sm:$0xf] }
  0xf9   : > { %3352 = vmatmul.mubr.msk.bf16.vlgmr.msra.gmra.mrb[48].mxu0 %vm242_vm3, %v3350_v22  ;;  %3549 = vmatmul.mubr.msk.bf16.vlgmr.msra.gmra.mrb[48].mxu1 %vm242_vm3, %v3350_v22  ;;  %v1771_v33 = vsel %vm246_vm2, %v1764_v29, 0 }
  0xfa   : > { %1670 = vmatpush1.bf16.msra.mxu0 %v1661_v23  ;;  %3553 = vmatpush3.bf16.msra.mxu1 %v1667_v24 }
  0xfb   : > { %v1760_v27 = vpop.permute.xlu0 %1759  ;;  %v1762_v28 = vpop.permute.xlu1 %1761  ;;  %3554 = vmatprep.mubr.msk.bf16.mxu1 %vm3776_vm0, %v3774_v0  ;;  %1701 = vmatprep.mubr.bf16.mxu0 %v3775_v1 }
  0xfc   : > { %v1765_v30 = vsel %vm1763_vm11, %v1758_v26, %v1760_v27  ;;  %v1766_v31 = vsel %vm1763_vm11, %v1760_v27, %v1762_v28  ;;  %3558 = vmatprep.subr.bf16.mxu1 %v3774_v0 }
  0xfd   : > { %3359 = vmatprep.subr.msk.bf16.mxu0 %vm246_vm2, %v1765_v30  ;;  %v1777_v35 = vsel %vm246_vm2, %v1766_v31, 0 }
  0xff   : > { %v1866_v36 = vpop.permute.xlu0 %1865  ;;  %v1868_v38 = vpop.permute.xlu1 %1867 }
 0x100   : > { %v1874_v41 = vsel %vm1873_vm12, %v1866_v36, %v1868_v38  ;;  %v3389_v36 = vld [vmem:[%s4501_s1 + $0x50] sm:$0xf] }
 0x101   : > { %3356 = vmatmul.mubr.msk.bf16.vlgmr.msra.gmra.mrb[52].mxu0 %vm242_vm3, %v3354_v32  ;;  %3555 = vmatmul.mubr.msk.bf16.vlgmr.msra.gmra.mrb[52].mxu1 %vm242_vm3, %v3354_v32  ;;  %v1881_v45 = vsel %vm246_vm2, %v1874_v41, 0 }
 0x102   : > { %1780 = vmatpush1.bf16.msra.mxu0 %v1771_v33  ;;  %3559 = vmatpush3.bf16.msra.mxu1 %v1777_v35 }
 0x103   : > { %v1870_v39 = vpop.permute.xlu0 %1869  ;;  %v1872_v40 = vpop.permute.xlu1 %1871  ;;  %3560 = vmatprep.mubr.msk.bf16.mxu1 %vm3776_vm0, %v3774_v0  ;;  %1811 = vmatprep.mubr.bf16.mxu0 %v3775_v1 }
 0x104   : > { %v1875_v42 = vsel %vm1873_vm12, %v1868_v38, %v1870_v39  ;;  %v1876_v43 = vsel %vm1873_vm12, %v1870_v39, %v1872_v40  ;;  %3564 = vmatprep.subr.bf16.mxu1 %v3774_v0 }
 0x105   : > { %3363 = vmatprep.subr.msk.bf16.mxu0 %vm246_vm2, %v1875_v42  ;;  %v1887_v46 = vsel %vm246_vm2, %v1876_v43, 0 }
 0x107   : > { %v1976_v49 = vpop.permute.xlu0 %1975 }
 0x109   : > { %3360 = vmatmul.mubr.msk.bf16.vlgmr.msra.gmra.mrb[56].mxu0 %vm242_vm3, %v3358_v44  ;;  %3561 = vmatmul.mubr.msk.bf16.vlgmr.msra.gmra.mrb[56].mxu1 %vm242_vm3, %v3358_v44  ;;  %v1978_v50 = vpop.permute.xlu1 %1977 }
 0x10a   : > { %1890 = vmatpush1.bf16.msra.mxu0 %v1881_v45  ;;  %3565 = vmatpush3.bf16.msra.mxu1 %v1887_v46  ;;  %v1984_v51 = vsel %vm1983_vm13, %v1976_v49, %v1978_v50  ;;  %v3393_v49 = vld [vmem:[%s4501_s1 + $0x54] sm:$0xf] }
 0x10b   : > { %3566 = vmatprep.mubr.msk.bf16.mxu1 %vm3776_vm0, %v3774_v0  ;;  %1921 = vmatprep.mubr.bf16.mxu0 %v3775_v1  ;;  %v1991_v57 = vsel %vm246_vm2, %v1984_v51, 0  ;;  %v3185_v51 = vld [vmem:[%s4502_s2] sm:$0xff] }
 0x10c   : > { %v1980_v52 = vpop.permute.xlu0 %1979  ;;  %3570 = vmatprep.subr.bf16.mxu1 %v3774_v0  ;;  %3188 = vperm.xlu0 %3698, %v3185_v51  }
 0x10d   : > { %v1985_v53 = vsel %vm1983_vm13, %v1978_v50, %v1980_v52  ;;  %v1982_v54 = vpop.permute.xlu1 %1981 }
 0x10e   : > { %3367 = vmatprep.subr.msk.bf16.mxu0 %vm246_vm2, %v1985_v53  ;;  %v1986_v55 = vsel %vm1983_vm13, %v1980_v52, %v1982_v54 }
 0x10f   : > { %v1997_v58 = vsel %vm246_vm2, %v1986_v55, 0 }
 0x110   : > { %v2086_v59 = vpop.permute.xlu0 %2085 }
 0x111   : > { %3364 = vmatmul.mubr.msk.bf16.vlgmr.msra.gmra.mrb[60].mxu0 %vm242_vm3, %v3362_v56  ;;  %3567 = vmatmul.mubr.msk.bf16.vlgmr.msra.gmra.mrb[60].mxu1 %vm242_vm3, %v3362_v56  ;;  %v2088_v60 = vpop.permute.xlu1 %2087 }
 0x112   : > { %2000 = vmatpush1.bf16.msra.mxu0 %v1991_v57  ;;  %3571 = vmatpush3.bf16.msra.mxu1 %v1997_v58  ;;  %v2094_v61 = vsel %vm2093_vm14, %v2086_v59, %v2088_v60  ;;  %v3194_v57 = vld [vmem:[%s212_s11] sm:$0xff] }
 0x113   : > { %2031 = vmatprep.mubr.bf16.mxu0 %v3775_v1  ;;  %3572 = vmatprep.mubr.msk.bf16.mxu1 %vm3776_vm0, %v3774_v0  ;;  %v2101_v5 = vsel %vm246_vm2, %v2094_v61, 0  ;;  %v3397_v61 = vld [vmem:[%s4501_s1 + $0x58] sm:$0xf] }
 0x114   : > { %v2090_v62 = vpop.permute.xlu0 %2089  ;;  %3576 = vmatprep.subr.bf16.mxu1 %v3774_v0  ;;  %3197 = vperm.xlu1 %3699, %v3194_v57  }
 0x115   : > { %v2095_v63 = vsel %vm2093_vm14, %v2088_v60, %v2090_v62  ;;  %v2092_v2 = vpop.permute.xlu1 %2091 }
 0x116   : > { %3371 = vmatprep.subr.msk.bf16.mxu0 %vm246_vm2, %v2095_v63  ;;  %v2096_v3 = vsel %vm2093_vm14, %v2090_v62, %v2092_v2 }
 0x117   : > { %v2107_v6 = vsel %vm246_vm2, %v2096_v3, 0 }
 0x118   : > { %v2316_v7 = vpop.permute.xlu0 %2315 }
 0x119   : > { %3368 = vmatmul.mubr.msk.bf16.vlgmr.msra.gmra.mrb[64].mxu0 %vm242_vm3, %v3366_v4  ;;  %3573 = vmatmul.mubr.msk.bf16.vlgmr.msra.gmra.mrb[64].mxu1 %vm242_vm3, %v3366_v4  ;;  %v2318_v8 = vpop.permute.xlu1 %2317 }
 0x11a   : > { %2110 = vmatpush1.bf16.msra.mxu0 %v2101_v5  ;;  %3577 = vmatpush3.bf16.msra.mxu1 %v2107_v6  ;;  %v2323_v14 = vsel %vm238_vm1, %v2316_v7, %v2318_v8 }
 0x11b   : > { %3578 = vmatprep.mubr.msk.bf16.mxu1 %vm3776_vm0, %v3774_v0  ;;  %2141 = vmatprep.mubr.bf16.mxu0 %v3775_v1  ;;  %v2330_v17 = vsel %vm246_vm2, %v2323_v14, 0 }
 0x11c   : > { %3378 = vmatprep.subr.msk.bf16.mxu0 %vm246_vm2, %v4030_v37  ;;  %3582 = vmatprep.subr.bf16.mxu1 %v3774_v0 }
 0x11e   : > { %v2320_v11 = vpop.permute.xlu0 %2319 }
 0x11f   : > { %v2324_v48 = vsel %vm238_vm1, %v2318_v8, %v2320_v11  ;;  %v2322_v13 = vpop.permute.xlu1 %2321 }
 0x120   : > { %v2325_v34 = vsel %vm238_vm1, %v2320_v11, %v2322_v13 }
 0x121   : > { %3372 = vmatmul.mubr.msk.bf16.vlgmr.msra.gmra.mrb[68].mxu0 %vm242_vm3, %v3370_v10  ;;  %3579 = vmatmul.mubr.msk.bf16.vlgmr.msra.gmra.mrb[68].mxu1 %vm242_vm3, %v3370_v10  ;;  %v2336_v18 = vsel %vm246_vm2, %v2325_v34, 0 }
 0x122   : > { %2218 = vmatpush1.bf16.msra.mxu0 %v2209_v47  ;;  %3583 = vmatpush3.bf16.msra.mxu1 %v2215_v12  ;;  %v2425_v37 = vpop.permute.xlu0 %2424 }
 0x123   : > { %3386 = vmatprep.subr.msk.bf16.mxu0 %vm246_vm2, %v2324_v48  ;;  %3584 = vmatprep.mubr.msk.bf16.mxu1 %vm3776_vm0, %v3774_v0 }
 0x124   : > { %2249 = vmatprep.mubr.bf16.mxu0 %v3775_v1  ;;  %3588 = vmatprep.subr.bf16.mxu1 %v3774_v0 }
 0x126   : > { %v2427_v16 = vpop.permute.xlu1 %2426 }
 0x127   : > { %v2429_v19 = vpop.permute.xlu0 %2428  ;;  %v2432_v22 = vsel %vm443_vm4, %v2425_v37, %v2427_v16 }
 0x128   : > { %v2433_v20 = vsel %vm443_vm4, %v2427_v16, %v2429_v19  ;;  %v2439_v27 = vsel %vm246_vm2, %v2432_v22, 0 }
 0x129   : > { %3379 = vmatmul.mubr.msk.bf16.vlgmr.msra.gmra.mrb[72].mxu0 %vm242_vm3, %v3374_v15  ;;  %3585 = vmatmul.mubr.msk.bf16.vlgmr.msra.gmra.mrb[72].mxu1 %vm242_vm3, %v3374_v15  ;;  %v3405_v15 = vld [vmem:[%s4501_s1 + $0x60] sm:$0xf] }
 0x12a   : > { %2339 = vmatpush1.bf16.msra.mxu0 %v2330_v17  ;;  %3589 = vmatpush3.bf16.msra.mxu1 %v2336_v18  ;;  %v2431_v21 = vpop.permute.xlu1 %2430 }
 0x12b   : > { %3390 = vmatprep.subr.msk.bf16.mxu0 %vm246_vm2, %v2433_v20  ;;  %3590 = vmatprep.mubr.msk.bf16.mxu1 %vm3776_vm0, %v3774_v0  ;;  %v2434_v23 = vsel %vm443_vm4, %v2429_v19, %v2431_v21 }
 0x12c   : > { %2370 = vmatprep.mubr.bf16.mxu0 %v3775_v1  ;;  %3594 = vmatprep.subr.bf16.mxu1 %v3774_v0  ;;  %v2445_v28 = vsel %vm246_vm2, %v2434_v23, 0 }
 0x12d   : > { %v2534_v24 = vpop.permute.xlu0 %2533 }
 0x12e   : > { %v2536_v26 = vpop.permute.xlu1 %2535 }
 0x12f   : > { %v2541_v32 = vsel %vm553_vm5, %v2534_v24, %v2536_v26  ;;  %v3409_v24 = vld [vmem:[%s4501_s1 + $0x64] sm:$0xf] }
 0x130   : > { %v2548_v39 = vsel %vm246_vm2, %v2541_v32, 0 }
 0x131   : > { %3387 = vmatmul.mubr.msk.bf16.vlgmr.msra.gmra.mrb[76].mxu0 %vm242_vm3, %v3381_v25  ;;  %3591 = vmatmul.mubr.msk.bf16.vlgmr.msra.gmra.mrb[76].mxu1 %vm242_vm3, %v3381_v25  ;;  %v2538_v29 = vpop.permute.xlu0 %2537 }
 0x132   : > { %2448 = vmatpush1.bf16.msra.mxu0 %v2439_v27  ;;  %3595 = vmatpush3.bf16.msra.mxu1 %v2445_v28  ;;  %v2542_v30 = vsel %vm553_vm5, %v2536_v26, %v2538_v29  ;;  %v2540_v31 = vpop.permute.xlu1 %2539  ;;  %v3413_v27 = vld [vmem:[%s4501_s1 + $0x68] sm:$0xf] }
 0x133   : > { %3394 = vmatprep.subr.msk.bf16.mxu0 %vm246_vm2, %v2542_v30  ;;  %3596 = vmatprep.mubr.msk.bf16.mxu1 %vm3776_vm0, %v3774_v0  ;;  %v2543_v33 = vsel %vm553_vm5, %v2538_v29, %v2540_v31 }
 0x134   : > { %2479 = vmatprep.mubr.bf16.mxu0 %v3775_v1  ;;  %3600 = vmatprep.subr.bf16.mxu1 %v3774_v0  ;;  %v2554_v40 = vsel %vm246_vm2, %v2543_v33, 0 }
 0x135   : > { %v2643_v35 = vpop.permute.xlu0 %2642 }
 0x136   : > { %v2645_v38 = vpop.permute.xlu1 %2644 }
 0x137   : > { %v2650_v44 = vsel %vm663_vm6, %v2643_v35, %v2645_v38 }
 0x138   : > { %v2657_v52 = vsel %vm246_vm2, %v2650_v44, 0 }
 0x139   : > { %3391 = vmatmul.mubr.msk.bf16.vlgmr.msra.gmra.mrb[80].mxu0 %vm242_vm3, %v3389_v36  ;;  %3597 = vmatmul.mubr.msk.bf16.vlgmr.msra.gmra.mrb[80].mxu1 %vm242_vm3, %v3389_v36  ;;  %v2647_v41 = vpop.permute.xlu0 %2646 }
 0x13a   : > { %2557 = vmatpush1.bf16.msra.mxu0 %v2548_v39  ;;  %3601 = vmatpush3.bf16.msra.mxu1 %v2554_v40  ;;  %v2651_v42 = vsel %vm663_vm6, %v2645_v38, %v2647_v41  ;;  %v2649_v43 = vpop.permute.xlu1 %2648 }
 0x13b   : > { %3398 = vmatprep.subr.msk.bf16.mxu0 %vm246_vm2, %v2651_v42  ;;  %3602 = vmatprep.mubr.msk.bf16.mxu1 %vm3776_vm0, %v3774_v0  ;;  %v2652_v45 = vsel %vm663_vm6, %v2647_v41, %v2649_v43 }
 0x13c   : > { %2588 = vmatprep.mubr.bf16.mxu0 %v3775_v1  ;;  %3606 = vmatprep.subr.bf16.mxu1 %v3774_v0  ;;  %v2663_v53 = vsel %vm246_vm2, %v2652_v45, 0 }
 0x13d   : > { %v2752_v46 = vpop.permute.xlu0 %2751 }
 0x13e   : > { %v2754_v50 = vpop.permute.xlu1 %2753 }
 0x13f   : > { %v2759_v58 = vsel %vm773_vm7, %v2752_v46, %v2754_v50 }
 0x140   : > { %v2766_v63 = vsel %vm246_vm2, %v2759_v58, 0 }
 0x141   : > { %3395 = vmatmul.mubr.msk.bf16.vlgmr.msra.gmra.mrb[84].mxu0 %vm242_vm3, %v3393_v49  ;;  %3603 = vmatmul.mubr.msk.bf16.vlgmr.msra.gmra.mrb[84].mxu1 %vm242_vm3, %v3393_v49  ;;  %v2756_v54 = vpop.permute.xlu0 %2755 }
 0x142   : > { %2666 = vmatpush1.bf16.msra.mxu0 %v2657_v52  ;;  %3607 = vmatpush3.bf16.msra.mxu1 %v2663_v53  ;;  %v2760_v55 = vsel %vm773_vm7, %v2754_v50, %v2756_v54  ;;  %v2758_v56 = vpop.permute.xlu1 %2757 }
 0x143   : > { %3402 = vmatprep.subr.msk.bf16.mxu0 %vm246_vm2, %v2760_v55  ;;  %3608 = vmatprep.mubr.msk.bf16.mxu1 %vm3776_vm0, %v3774_v0  ;;  %v2761_v59 = vsel %vm773_vm7, %v2756_v54, %v2758_v56 }
 0x144   : > { %2697 = vmatprep.mubr.bf16.mxu0 %v3775_v1  ;;  %3612 = vmatprep.subr.bf16.mxu1 %v3774_v0  ;;  %v2772_v2 = vsel %vm246_vm2, %v2761_v59, 0 }
 0x145   : > { %v2861_v60 = vpop.permute.xlu0 %2860 }
 0x146   : > { %v2863_v62 = vpop.permute.xlu1 %2862 }
 0x147   : > { %v2868_v6 = vsel %vm883_vm8, %v2861_v60, %v2863_v62 }
 0x148   : > { %v2875_v11 = vsel %vm246_vm2, %v2868_v6, 0 }
 0x149   : > { %3399 = vmatmul.mubr.msk.bf16.vlgmr.msra.gmra.mrb[88].mxu0 %vm242_vm3, %v3397_v61  ;;  %3609 = vmatmul.mubr.msk.bf16.vlgmr.msra.gmra.mrb[88].mxu1 %vm242_vm3, %v3397_v61  ;;  %v2865_v3 = vpop.permute.xlu0 %2864 }
 0x14a   : > { %2775 = vmatpush1.bf16.msra.mxu0 %v2766_v63  ;;  %3613 = vmatpush3.bf16.msra.mxu1 %v2772_v2  ;;  %v2869_v4 = vsel %vm883_vm8, %v2863_v62, %v2865_v3  ;;  %v2867_v5 = vpop.permute.xlu1 %2866 }
 0x14b   : > { %3406 = vmatprep.subr.msk.bf16.mxu0 %vm246_vm2, %v2869_v4  ;;  %3614 = vmatprep.mubr.msk.bf16.mxu1 %vm3776_vm0, %v3774_v0  ;;  %v2870_v7 = vsel %vm883_vm8, %v2865_v3, %v2867_v5 }
 0x14c   : > { %2806 = vmatprep.mubr.bf16.mxu0 %v3775_v1  ;;  %3618 = vmatprep.subr.bf16.mxu1 %v3774_v0  ;;  %v2881_v47 = vsel %vm246_vm2, %v2870_v7, 0 }
 0x14d   : > { %v2970_v8 = vpop.permute.xlu0 %2969 }
 0x14e   : > { %v2972_v10 = vpop.permute.xlu1 %2971 }
 0x14f   : > { %v2977_v37 = vsel %vm993_vm9, %v2970_v8, %v2972_v10 }
 0x150   : > { %v2984_v17 = vsel %vm246_vm2, %v2977_v37, 0 }
 0x151   : > { %3403 = vmatmul.mubr.msk.bf16.vlgmr.msra.gmra.mrb[92].mxu0 %vm242_vm3, %v3401_v9  ;;  %3615 = vmatmul.mubr.msk.bf16.vlgmr.msra.gmra.mrb[92].mxu1 %vm242_vm3, %v3401_v9  ;;  %v2974_v12 = vpop.permute.xlu0 %2973 }
 0x152   : > { %2884 = vmatpush1.bf16.msra.mxu0 %v2875_v11  ;;  %3619 = vmatpush3.bf16.msra.mxu1 %v2881_v47  ;;  %v2978_v48 = vsel %vm993_vm9, %v2972_v10, %v2974_v12  ;;  %v2976_v13 = vpop.permute.xlu1 %2975 }
 0x153   : > { %3410 = vmatprep.subr.msk.bf16.mxu0 %vm246_vm2, %v2978_v48  ;;  %3620 = vmatprep.mubr.msk.bf16.mxu1 %vm3776_vm0, %v3774_v0  ;;  %v2979_v14 = vsel %vm993_vm9, %v2974_v12, %v2976_v13 }
 0x154   : > { %2915 = vmatprep.mubr.bf16.mxu0 %v3775_v1  ;;  %3624 = vmatprep.subr.bf16.mxu1 %v3774_v0  ;;  %v2990_v18 = vsel %vm246_vm2, %v2979_v14, 0 }
 0x155   : > { %v3079_v34 = vpop.permute.xlu0 %3078 }
 0x156   : > { %v3081_v16 = vpop.permute.xlu1 %3080 }
 0x157   : > { %v3086_v22 = vsel %vm1103_vm10, %v3079_v34, %v3081_v16 }
 0x158   : > { %v3093_v25 = vsel %vm246_vm2, %v3086_v22, 0 }
 0x159   : > { %3407 = vmatmul.mubr.msk.bf16.vlgmr.msra.gmra.mrb[96].mxu0 %vm242_vm3, %v3405_v15  ;;  %3621 = vmatmul.mubr.msk.bf16.vlgmr.msra.gmra.mrb[96].mxu1 %vm242_vm3, %v3405_v15  ;;  %v3083_v19 = vpop.permute.xlu0 %3082 }
 0x15a   : > { %2993 = vmatpush1.bf16.msra.mxu0 %v2984_v17  ;;  %3625 = vmatpush3.bf16.msra.mxu1 %v2990_v18  ;;  %v3087_v20 = vsel %vm1103_vm10, %v3081_v16, %v3083_v19  ;;  %v3085_v21 = vpop.permute.xlu1 %3084 }
 0x15b   : > { %3414 = vmatprep.subr.msk.bf16.mxu0 %vm246_vm2, %v3087_v20  ;;  %3024 = vmatprep.mubr.bf16.mxu0 %v3775_v1  ;;  %v3088_v23 = vsel %vm1103_vm10, %v3083_v19, %v3085_v21 }
 0x15c   : > { %3626 = vmatprep.mubr.msk.bf16.mxu1 %vm3776_vm0, %v3774_v0  ;;  %3630 = vmatprep.subr.bf16.mxu1 %v3774_v0  ;;  %v3099_v26 = vsel %vm246_vm2, %v3088_v23, 0 }
 0x161   : > { %3411 = vmatmul.mubr.msk.bf16.vlgmr.msra.gmra.mrb[100].mxu0 %vm242_vm3, %v3409_v24  ;;  %3627 = vmatmul.mubr.msk.bf16.vlgmr.msra.gmra.mrb[100].mxu1 %vm242_vm3, %v3409_v24 }
 0x162   : > { %3102 = vmatpush1.bf16.msra.mxu0 %v3093_v25  ;;  %3631 = vmatpush3.bf16.msra.mxu1 %v3099_v26 }
 0x163   : > { %3133 = vmatprep.mubr.bf16.mxu0 %v3775_v1  ;;  %3632 = vmatprep.mubr.msk.bf16.mxu1 %vm3776_vm0, %v3774_v0 }
 0x169   : > { %3415 = vmatmul.mubr.msk.bf16.vlgmr.msra.gmra.mrb[104].mxu0 %vm242_vm3, %v3413_v27  ;;  %3633 = vmatmul.mubr.msk.bf16.vlgmr.msra.gmra.mrb[104].mxu1 %vm242_vm3, %v3413_v27 }
 0x16c   : > { %v290_v28 = vpop.f32.mrb[0].mxu0  ;;  %v331_v29 = vpop.f32.mrb[0].mxu1 }
 0x16d   : > { %v292_v30 = vpop.f32.mrb[1].mxu0  ;;  %v3478_v31 = vpop.f32.mrb[1].mxu1 }
 0x16e   : > { %v294_v32 = vpop.f32.mrb[2].mxu0  ;;  %v334_v33 = vpop.f32.mrb[2].mxu1 }
 0x16f   : > { %v295_v35 = vpop.f32.mrb[3].mxu0  ;;  %v3479_v36 = vpop.f32.mrb[3].mxu1 }
 0x174   : > { %v386_v1 = vpop.f32.mrb[4].mxu0  ;;  %v427_v38 = vpop.f32.mrb[4].mxu1 }
 0x175   : > { %v387_v39 = vadd.f32 %v386_v1, %v290_v28  ;;  %v428_v0 = vadd.f32 %v427_v38, %v331_v29  ;;  %v388_v40 = vpop.f32.mrb[5].mxu0  ;;  %v3484_v41 = vpop.f32.mrb[5].mxu1 }
 0x176   : > { %v389_v42 = vadd.f32 %v388_v40, %v292_v30  ;;  %v390_v43 = vpop.f32.mrb[6].mxu0  ;;  %v430_v44 = vpop.f32.mrb[6].mxu1 }
 0x177   : > { %v391_v45 = vpop.f32.mrb[7].mxu0  ;;  %v3485_v46 = vpop.f32.mrb[7].mxu1 }
 0x17c   : > { %v493_v49 = vpop.f32.mrb[8].mxu0  ;;  %v534_v50 = vpop.f32.mrb[8].mxu1 }
 0x17d   : > { %v540_v51 = vadd.f32 %v493_v49, %v387_v39  ;;  %v542_v52 = vadd.f32 %v534_v50, %v428_v0  ;;  %v495_v53 = vpop.f32.mrb[9].mxu0  ;;  %v3490_v54 = vpop.f32.mrb[9].mxu1 }
 0x17e   : > { %v541_v55 = vadd.f32 %v495_v53, %v389_v42  ;;  %v497_v56 = vpop.f32.mrb[10].mxu0  ;;  %v537_v57 = vpop.f32.mrb[10].mxu1 }
 0x17f   : > { %v498_v58 = vpop.f32.mrb[11].mxu0  ;;  %v3491_v59 = vpop.f32.mrb[11].mxu1 }
 0x184   : > { %v603_v60 = vpop.f32.mrb[12].mxu0  ;;  %v644_v61 = vpop.f32.mrb[12].mxu1 }
 0x185   : > { %v650_v62 = vadd.f32 %v603_v60, %v540_v51  ;;  %v652_v63 = vadd.f32 %v644_v61, %v542_v52  ;;  %v605_v2 = vpop.f32.mrb[13].mxu0  ;;  %v3496_v3 = vpop.f32.mrb[13].mxu1 }
 0x186   : > { %v651_v4 = vadd.f32 %v605_v2, %v541_v55  ;;  %v607_v5 = vpop.f32.mrb[14].mxu0  ;;  %v647_v6 = vpop.f32.mrb[14].mxu1 }
 0x187   : > { %v608_v7 = vpop.f32.mrb[15].mxu0  ;;  %v3497_v8 = vpop.f32.mrb[15].mxu1 }
 0x18c   : > { %v713_v9 = vpop.f32.mrb[16].mxu0  ;;  %v754_v10 = vpop.f32.mrb[16].mxu1 }
 0x18d   : > { %v760_v11 = vadd.f32 %v713_v9, %v650_v62  ;;  %v762_v47 = vadd.f32 %v754_v10, %v652_v63  ;;  %v715_v12 = vpop.f32.mrb[17].mxu0  ;;  %v3502_v48 = vpop.f32.mrb[17].mxu1 }
 0x18e   : > { %v761_v13 = vadd.f32 %v715_v12, %v651_v4  ;;  %v717_v37 = vpop.f32.mrb[18].mxu0  ;;  %v757_v14 = vpop.f32.mrb[18].mxu1 }
 0x18f   : > { %v718_v34 = vpop.f32.mrb[19].mxu0  ;;  %v3503_v15 = vpop.f32.mrb[19].mxu1 }
 0x194   : > { %v823_v16 = vpop.f32.mrb[20].mxu0  ;;  %v864_v17 = vpop.f32.mrb[20].mxu1 }
 0x195   : > { %v870_v18 = vadd.f32 %v823_v16, %v760_v11  ;;  %v872_v19 = vadd.f32 %v864_v17, %v762_v47  ;;  %v825_v20 = vpop.f32.mrb[21].mxu0  ;;  %v3508_v21 = vpop.f32.mrb[21].mxu1 }
 0x196   : > { %v871_v22 = vadd.f32 %v825_v20, %v761_v13  ;;  %v827_v23 = vpop.f32.mrb[22].mxu0  ;;  %v867_v24 = vpop.f32.mrb[22].mxu1 }
 0x197   : > { %v828_v25 = vpop.f32.mrb[23].mxu0  ;;  %v3509_v26 = vpop.f32.mrb[23].mxu1 }
 0x19c   : > { %v933_v27 = vpop.f32.mrb[24].mxu0  ;;  %v974_v28 = vpop.f32.mrb[24].mxu1 }
 0x19d   : > { %v980_v29 = vadd.f32 %v933_v27, %v870_v18  ;;  %v982_v30 = vadd.f32 %v974_v28, %v872_v19  ;;  %v935_v31 = vpop.f32.mrb[25].mxu0  ;;  %v3514_v32 = vpop.f32.mrb[25].mxu1 }
 0x19e   : > { %v981_v33 = vadd.f32 %v935_v31, %v871_v22  ;;  %v937_v35 = vpop.f32.mrb[26].mxu0  ;;  %v977_v36 = vpop.f32.mrb[26].mxu1 }
 0x19f   : > { %v938_v1 = vpop.f32.mrb[27].mxu0  ;;  %v3515_v38 = vpop.f32.mrb[27].mxu1 }
 0x1a4   : > { %v1043_v39 = vpop.f32.mrb[28].mxu0  ;;  %v1084_v0 = vpop.f32.mrb[28].mxu1 }
 0x1a5   : > { %v1090_v40 = vadd.f32 %v1043_v39, %v980_v29  ;;  %v1092_v41 = vadd.f32 %v1084_v0, %v982_v30  ;;  %v1045_v42 = vpop.f32.mrb[29].mxu0  ;;  %v3520_v43 = vpop.f32.mrb[29].mxu1 }
 0x1a6   : > { %v1091_v44 = vadd.f32 %v1045_v42, %v981_v33  ;;  %v1047_v45 = vpop.f32.mrb[30].mxu0  ;;  %v1087_v46 = vpop.f32.mrb[30].mxu1 }
 0x1a7   : > { %v1048_v49 = vpop.f32.mrb[31].mxu0  ;;  %v3521_v50 = vpop.f32.mrb[31].mxu1 }
 0x1ac   : > { %v1153_v51 = vpop.f32.mrb[32].mxu0  ;;  %v1194_v52 = vpop.f32.mrb[32].mxu1 }
 0x1ad   : > { %v1200_v53 = vadd.f32 %v1153_v51, %v1090_v40  ;;  %v1202_v54 = vadd.f32 %v1194_v52, %v1092_v41  ;;  %v1155_v55 = vpop.f32.mrb[33].mxu0  ;;  %v3526_v56 = vpop.f32.mrb[33].mxu1 }
 0x1ae   : > { %v1201_v57 = vadd.f32 %v1155_v55, %v1091_v44  ;;  %v1157_v58 = vpop.f32.mrb[34].mxu0  ;;  %v1197_v59 = vpop.f32.mrb[34].mxu1 }
 0x1af   : > { %v1158_v60 = vpop.f32.mrb[35].mxu0  ;;  %v3527_v61 = vpop.f32.mrb[35].mxu1 }
 0x1b4   : > { %v1263_v62 = vpop.f32.mrb[36].mxu0  ;;  %v1304_v63 = vpop.f32.mrb[36].mxu1 }
 0x1b5   : > { %v1310_v2 = vadd.f32 %v1263_v62, %v1200_v53  ;;  %v1312_v3 = vadd.f32 %v1304_v63, %v1202_v54  ;;  %v1265_v4 = vpop.f32.mrb[37].mxu0  ;;  %v3532_v5 = vpop.f32.mrb[37].mxu1 }
 0x1b6   : > { %v1311_v6 = vadd.f32 %v1265_v4, %v1201_v57  ;;  %v1267_v7 = vpop.f32.mrb[38].mxu0  ;;  %v1307_v8 = vpop.f32.mrb[38].mxu1 }
 0x1b7   : > { %v1268_v9 = vpop.f32.mrb[39].mxu0  ;;  %v3533_v10 = vpop.f32.mrb[39].mxu1 }
 0x1bc   : > { %v1373_v11 = vpop.f32.mrb[40].mxu0  ;;  %v1414_v47 = vpop.f32.mrb[40].mxu1 }
 0x1bd   : > { %v1420_v12 = vadd.f32 %v1373_v11, %v1310_v2  ;;  %v1422_v48 = vadd.f32 %v1414_v47, %v1312_v3  ;;  %v1375_v13 = vpop.f32.mrb[41].mxu0  ;;  %v3538_v37 = vpop.f32.mrb[41].mxu1 }
 0x1be   : > { %v1421_v14 = vadd.f32 %v1375_v13, %v1311_v6  ;;  %v1377_v34 = vpop.f32.mrb[42].mxu0  ;;  %v1417_v15 = vpop.f32.mrb[42].mxu1 }
 0x1bf   : > { %v1378_v16 = vpop.f32.mrb[43].mxu0  ;;  %v3539_v17 = vpop.f32.mrb[43].mxu1 }
 0x1c4   : > { %v1483_v18 = vpop.f32.mrb[44].mxu0  ;;  %v1524_v19 = vpop.f32.mrb[44].mxu1 }
 0x1c5   : > { %v1530_v20 = vadd.f32 %v1483_v18, %v1420_v12  ;;  %v1532_v21 = vadd.f32 %v1524_v19, %v1422_v48  ;;  %v1485_v22 = vpop.f32.mrb[45].mxu0  ;;  %v3544_v23 = vpop.f32.mrb[45].mxu1 }
 0x1c6   : > { %v1531_v24 = vadd.f32 %v1485_v22, %v1421_v14  ;;  %v1487_v25 = vpop.f32.mrb[46].mxu0  ;;  %v1527_v26 = vpop.f32.mrb[46].mxu1 }
 0x1c7   : > { %v1488_v27 = vpop.f32.mrb[47].mxu0  ;;  %v3545_v28 = vpop.f32.mrb[47].mxu1 }
 0x1cc   : > { %v1593_v29 = vpop.f32.mrb[48].mxu0  ;;  %v1634_v30 = vpop.f32.mrb[48].mxu1 }
 0x1cd   : > { %v1640_v31 = vadd.f32 %v1593_v29, %v1530_v20  ;;  %v1642_v32 = vadd.f32 %v1634_v30, %v1532_v21  ;;  %v1595_v33 = vpop.f32.mrb[49].mxu0  ;;  %v3550_v35 = vpop.f32.mrb[49].mxu1 }
 0x1ce   : > { %v1641_v36 = vadd.f32 %v1595_v33, %v1531_v24  ;;  %v1597_v1 = vpop.f32.mrb[50].mxu0  ;;  %v1637_v38 = vpop.f32.mrb[50].mxu1 }
 0x1cf   : > { %v1598_v39 = vpop.f32.mrb[51].mxu0  ;;  %v3551_v0 = vpop.f32.mrb[51].mxu1 }
 0x1d4   : > { %v1703_v40 = vpop.f32.mrb[52].mxu0  ;;  %v1744_v41 = vpop.f32.mrb[52].mxu1 }
 0x1d5   : > { %v1750_v42 = vadd.f32 %v1703_v40, %v1640_v31  ;;  %v1752_v43 = vadd.f32 %v1744_v41, %v1642_v32  ;;  %v1705_v44 = vpop.f32.mrb[53].mxu0  ;;  %v3556_v45 = vpop.f32.mrb[53].mxu1 }
 0x1d6   : > { %v1751_v46 = vadd.f32 %v1705_v44, %v1641_v36  ;;  %v1707_v49 = vpop.f32.mrb[54].mxu0  ;;  %v1747_v50 = vpop.f32.mrb[54].mxu1 }
 0x1d7   : > { %v1708_v51 = vpop.f32.mrb[55].mxu0  ;;  %v3557_v52 = vpop.f32.mrb[55].mxu1 }
 0x1dc   : > { %v1813_v53 = vpop.f32.mrb[56].mxu0  ;;  %v1854_v54 = vpop.f32.mrb[56].mxu1 }
 0x1dd   : > { %v1860_v55 = vadd.f32 %v1813_v53, %v1750_v42  ;;  %v1862_v56 = vadd.f32 %v1854_v54, %v1752_v43  ;;  %v1815_v57 = vpop.f32.mrb[57].mxu0  ;;  %v3562_v58 = vpop.f32.mrb[57].mxu1 }
 0x1de   : > { %v1861_v59 = vadd.f32 %v1815_v57, %v1751_v46  ;;  %v1817_v60 = vpop.f32.mrb[58].mxu0  ;;  %v1857_v61 = vpop.f32.mrb[58].mxu1 }
 0x1df   : > { %v1818_v62 = vpop.f32.mrb[59].mxu0  ;;  %v3563_v63 = vpop.f32.mrb[59].mxu1 }
 0x1e4   : > { %v1923_v2 = vpop.f32.mrb[60].mxu0  ;;  %v1964_v3 = vpop.f32.mrb[60].mxu1 }
 0x1e5   : > { %v1970_v4 = vadd.f32 %v1923_v2, %v1860_v55  ;;  %v1972_v5 = vadd.f32 %v1964_v3, %v1862_v56  ;;  %v1925_v6 = vpop.f32.mrb[61].mxu0  ;;  %v3568_v7 = vpop.f32.mrb[61].mxu1 }
 0x1e6   : > { %v1971_v8 = vadd.f32 %v1925_v6, %v1861_v59  ;;  %v1927_v9 = vpop.f32.mrb[62].mxu0  ;;  %v1967_v10 = vpop.f32.mrb[62].mxu1 }
 0x1e7   : > { %v1928_v11 = vpop.f32.mrb[63].mxu0  ;;  %v3569_v47 = vpop.f32.mrb[63].mxu1 }
 0x1ec   : > { %v2033_v12 = vpop.f32.mrb[64].mxu0  ;;  %v2074_v48 = vpop.f32.mrb[64].mxu1 }
 0x1ed   : > { %v2080_v13 = vadd.f32 %v2033_v12, %v1970_v4  ;;  %v2082_v37 = vadd.f32 %v2074_v48, %v1972_v5  ;;  %v2035_v14 = vpop.f32.mrb[65].mxu0  ;;  %v3574_v34 = vpop.f32.mrb[65].mxu1 }
 0x1ee   : > { %v2081_v15 = vadd.f32 %v2035_v14, %v1971_v8  ;;  %v2037_v16 = vpop.f32.mrb[66].mxu0  ;;  %v2077_v17 = vpop.f32.mrb[66].mxu1 }
 0x1ef   : > { %v2038_v18 = vpop.f32.mrb[67].mxu0  ;;  %v3575_v19 = vpop.f32.mrb[67].mxu1 }
 0x1f4   : > { %v2143_v20 = vpop.f32.mrb[68].mxu0  ;;  %v2184_v21 = vpop.f32.mrb[68].mxu1 }
 0x1f5   : > { %v2190_v22 = vadd.f32 %v2143_v20, %v2080_v13  ;;  %v2192_v23 = vadd.f32 %v2184_v21, %v2082_v37  ;;  %v2145_v24 = vpop.f32.mrb[69].mxu0  ;;  %v3580_v25 = vpop.f32.mrb[69].mxu1 }
 0x1f6   : > { %v2191_v26 = vadd.f32 %v2145_v24, %v2081_v15  ;;  %v2147_v27 = vpop.f32.mrb[70].mxu0  ;;  %v2187_v28 = vpop.f32.mrb[70].mxu1 }
 0x1f7   : > { %v2148_v29 = vpop.f32.mrb[71].mxu0  ;;  %v3581_v30 = vpop.f32.mrb[71].mxu1 }
 0x1fc   : > { %v2251_v31 = vpop.f32.mrb[72].mxu0  ;;  %v2292_v32 = vpop.f32.mrb[72].mxu1 }
 0x1fd   : > { %v2298_v33 = vadd.f32 %v2251_v31, %v2190_v22  ;;  %v2300_v35 = vadd.f32 %v2292_v32, %v2192_v23  ;;  %v2253_v36 = vpop.f32.mrb[73].mxu0  ;;  %v3586_v1 = vpop.f32.mrb[73].mxu1 }
 0x1fe   : > { %v2299_v38 = vadd.f32 %v2253_v36, %v2191_v26  ;;  %v2255_v39 = vpop.f32.mrb[74].mxu0  ;;  %v2295_v0 = vpop.f32.mrb[74].mxu1 }
 0x1ff   : > { %v2256_v40 = vpop.f32.mrb[75].mxu0  ;;  %v3587_v41 = vpop.f32.mrb[75].mxu1 }
 0x204   : > { %v2372_v42 = vpop.f32.mrb[76].mxu0  ;;  %v2413_v43 = vpop.f32.mrb[76].mxu1 }
 0x205   : > { %v2419_v44 = vadd.f32 %v2372_v42, %v2298_v33  ;;  %v2421_v45 = vadd.f32 %v2413_v43, %v2300_v35  ;;  %v2374_v46 = vpop.f32.mrb[77].mxu0  ;;  %v3592_v49 = vpop.f32.mrb[77].mxu1 }
 0x206   : > { %v2420_v50 = vadd.f32 %v2374_v46, %v2299_v38  ;;  %v2376_v51 = vpop.f32.mrb[78].mxu0  ;;  %v2416_v52 = vpop.f32.mrb[78].mxu1 }
 0x207   : > { %v2377_v53 = vpop.f32.mrb[79].mxu0  ;;  %v3593_v54 = vpop.f32.mrb[79].mxu1 }
 0x20c   : > { %v2481_v55 = vpop.f32.mrb[80].mxu0  ;;  %v2522_v56 = vpop.f32.mrb[80].mxu1 }
 0x20d   : > { %v2528_v57 = vadd.f32 %v2481_v55, %v2419_v44  ;;  %v2530_v58 = vadd.f32 %v2522_v56, %v2421_v45  ;;  %v2483_v59 = vpop.f32.mrb[81].mxu0  ;;  %v3598_v60 = vpop.f32.mrb[81].mxu1 }
 0x20e   : > { %v2529_v61 = vadd.f32 %v2483_v59, %v2420_v50  ;;  %v2485_v62 = vpop.f32.mrb[82].mxu0  ;;  %v2525_v63 = vpop.f32.mrb[82].mxu1 }
 0x20f   : > { %v2486_v2 = vpop.f32.mrb[83].mxu0  ;;  %v3599_v3 = vpop.f32.mrb[83].mxu1 }
 0x214   : > { %v2590_v4 = vpop.f32.mrb[84].mxu0  ;;  %v2631_v5 = vpop.f32.mrb[84].mxu1 }
 0x215   : > { %v2637_v6 = vadd.f32 %v2590_v4, %v2528_v57  ;;  %v2639_v7 = vadd.f32 %v2631_v5, %v2530_v58  ;;  %v2592_v8 = vpop.f32.mrb[85].mxu0  ;;  %v3604_v9 = vpop.f32.mrb[85].mxu1 }
 0x216   : > { %v2638_v10 = vadd.f32 %v2592_v8, %v2529_v61  ;;  %v2594_v11 = vpop.f32.mrb[86].mxu0  ;;  %v2634_v47 = vpop.f32.mrb[86].mxu1 }
 0x217   : > { %v2595_v12 = vpop.f32.mrb[87].mxu0  ;;  %v3605_v48 = vpop.f32.mrb[87].mxu1 }
 0x218   : > { %v3189_v57 = vpop.permute.xlu0 %3188  ;;  %v3198_v58 = vpop.permute.xlu1 %3197 }
 0x21c   : > { %v2699_v13 = vpop.f32.mrb[88].mxu0  ;;  %v2740_v37 = vpop.f32.mrb[88].mxu1 }
 0x21d   : > { %v2746_v14 = vadd.f32 %v2699_v13, %v2637_v6  ;;  %v2748_v34 = vadd.f32 %v2740_v37, %v2639_v7  ;;  %v2701_v15 = vpop.f32.mrb[89].mxu0  ;;  %v3610_v16 = vpop.f32.mrb[89].mxu1 }
 0x21e   : > { %v2747_v17 = vadd.f32 %v2701_v15, %v2638_v10  ;;  %v2703_v18 = vpop.f32.mrb[90].mxu0  ;;  %v2743_v19 = vpop.f32.mrb[90].mxu1 }
 0x21f   : > { %v2704_v20 = vpop.f32.mrb[91].mxu0  ;;  %v3611_v21 = vpop.f32.mrb[91].mxu1 }
 0x224   : > { %v2808_v22 = vpop.f32.mrb[92].mxu0  ;;  %v2849_v23 = vpop.f32.mrb[92].mxu1 }
 0x225   : > { %v2855_v24 = vadd.f32 %v2808_v22, %v2746_v14  ;;  %v2857_v25 = vadd.f32 %v2849_v23, %v2748_v34  ;;  %v2810_v26 = vpop.f32.mrb[93].mxu0  ;;  %v3616_v27 = vpop.f32.mrb[93].mxu1 }
 0x226   : > { %v2856_v28 = vadd.f32 %v2810_v26, %v2747_v17  ;;  %v2812_v29 = vpop.f32.mrb[94].mxu0  ;;  %v2852_v30 = vpop.f32.mrb[94].mxu1 }
 0x227   : > { %v2813_v31 = vpop.f32.mrb[95].mxu0  ;;  %v3617_v32 = vpop.f32.mrb[95].mxu1 }
 0x22c   : > { %v2917_v33 = vpop.f32.mrb[96].mxu0  ;;  %v2958_v35 = vpop.f32.mrb[96].mxu1 }
 0x22d   : > { %v2964_v36 = vadd.f32 %v2917_v33, %v2855_v24  ;;  %v2966_v1 = vadd.f32 %v2958_v35, %v2857_v25  ;;  %v2919_v38 = vpop.f32.mrb[97].mxu0  ;;  %v3622_v39 = vpop.f32.mrb[97].mxu1 }
 0x22e   : > { %v2965_v0 = vadd.f32 %v2919_v38, %v2856_v28  ;;  %v2921_v40 = vpop.f32.mrb[98].mxu0  ;;  %v2961_v41 = vpop.f32.mrb[98].mxu1 }
 0x22f   : > { %v2922_v42 = vpop.f32.mrb[99].mxu0  ;;  %v3623_v43 = vpop.f32.mrb[99].mxu1 }
 0x234   : > { %v3026_v44 = vpop.f32.mrb[100].mxu0  ;;  %v3067_v45 = vpop.f32.mrb[100].mxu1 }
 0x235   : > { %v3073_v46 = vadd.f32 %v3026_v44, %v2964_v36  ;;  %v3075_v49 = vadd.f32 %v3067_v45, %v2966_v1  ;;  %v3028_v50 = vpop.f32.mrb[101].mxu0  ;;  %v3628_v51 = vpop.f32.mrb[101].mxu1 }
 0x236   : > { %v3074_v52 = vadd.f32 %v3028_v50, %v2965_v0  ;;  %v3030_v53 = vpop.f32.mrb[102].mxu0  ;;  %v3070_v54 = vpop.f32.mrb[102].mxu1 }
 0x237   : > { %v3031_v55 = vpop.f32.mrb[103].mxu0  ;;  %v3629_v56 = vpop.f32.mrb[103].mxu1 }
 0x23c   : > { %v3135_v59 = vpop.f32.mrb[104].mxu0  ;;  %v3176_v60 = vpop.f32.mrb[104].mxu1 }
 0x23d   : > { %v3182_v61 = vadd.f32 %v3135_v59, %v3073_v46  ;;  %v3184_v62 = vadd.f32 %v3176_v60, %v3075_v49  ;;  %v3137_v63 = vpop.f32.mrb[105].mxu0  ;;  %v3634_v2 = vpop.f32.mrb[105].mxu1 }
 0x23e   : > { %v3183_v3 = vadd.f32 %v3137_v63, %v3074_v52  ;;  %v3179_v4 = vpop.f32.mrb[106].mxu1  ;;  %v3139_v5 = vpop.f32.mrb[106].mxu0 }
 0x23f   : > { %v3191_v6 = vadd.f32 %v3189_v57, %v3182_v61  ;;  %v3193_v7 = vadd.f32 %v3189_v57, %v3184_v62  ;;  %v3140_v8 = vpop.f32.mrb[107].mxu0  ;;  %v3635_v9 = vpop.f32.mrb[107].mxu1 }
 0x240   : > { %v3192_v10 = vadd.f32 %v3189_v57, %v3183_v3 }
 0x241   : > { %v3200_v11 = vmul.f32 %v3198_v58, %v3191_v6  ;;  %v3202_v47 = vmul.f32 %v3198_v58, %v3193_v7 }
 0x242   : > { %v3201_v12 = vmul.f32 %v3198_v58, %v3192_v10 }
 0x243   : > { %3203 = vst [vmem:[%s203_s30] sm:$0xff] %v3200_v11  ;;  %3205 = vst [vmem:[%s203_s30 + $0x10] sm:$0xff] %v3202_v47 }
 0x244   : > { %3204 = vst [vmem:[%s203_s30 + $0x8] sm:$0xff] %v3201_v12 }
 0x245   : > { %3723 = shalt.err (!%p3720_p3)
}
 0x246   : > { %s3724_s13 = scalar_lea.hbm %s4456_s27, 384  ;;  %s3728_s7 = scalar_lea.hbm %s4504_s4, 768 }
 0x247   : > { %p3725_p4 = scmp.ne.s32.totalorder %s4456_s27, %s3724_s13  ;;  %p3729_p9 = scmp.lt.u32.totalorder %s4456_s27, %s4504_s4 }
 0x248   : > { %p3730_p10 = scmp.lt.u32.totalorder %s3728_s7, %s3724_s13  ;;  %p3732_p12 = scmp.lt.u32.totalorder %s3724_s13, %s4456_s27 }
 0x249   : > { %p3726_p7 = pnand %p3725_p4, %p3858_p5 }
 0x24a   : > { %p3731_p11 = por %p3730_p10, %p3729_p9 }
 0x24b   : > { %p3727_p8 = pneg %p3726_p7 }
 0x24c   : > { %p3733_p13 = por %p3732_p12, %p3731_p11 }
 0x24e   : > { %p3734_p0 = pnand %p3733_p13, %p3727_p8 }
 0x250   : > { %3737 = shalt.err (!%p3734_p0)
}
 0x251   : > { %3639 = dma.vmem_to_hbm [thread:$0]  (%p3858_p5), %s4458_s10, 384, %s4456_s27, %s3207_s19  }
 0x252 PF: > { %p3645_p1 = scmp.ge.s32.totalorder %s3772_s18, 2  ;;  %s3233_s29 = sand.u32 1, %s3760_s15  }
 0x253   : > { %s3234_s9 = scalar_lea.sflag [#allocation3], %s3233_s29 }
 0x254   : > { %p3642_p2 = pnand %p3645_p1, %p3862_p6 }
 0x256   : > { %3755 = dma.done.wait (!%p3642_p2), %s3234_s9, 384  }
 0x257   : > { %3757 = vsyncadd (!%p3642_p2), %s3234_s9, 4294966912  ;;  %p14_p3 = scmp.ge.s32.totalorder %s3845_s21, 4   ;;  %s4507_s15 = smov %s3764_s16 }
 0x258   : > { %s4508_s16 = smov %s3768_s17  ;;  %s4509_s17 = smov %s3856_s24 }
 0x259   : > { %s4510_s18 = smov %s3845_s21  ;;  %16 = sbr.rel (!%p14_p3) target bundleno = 3 (0x3), region = 100 }
 0x260   :  { %3239 = vsyncpa [#allocation3], 1 }
 0x261   :  { %3241 = vsyncpa [#allocation3 + $0x1], 1 }

</bundles_post_ra>
